<compile_context>
chip_gen: v7x
topology: tpu7x:2x2x1
jax: 0.10.0
libtpu: 0.0.40
codegen_flags: <defaults>
</compile_context>

<pallas_src>
import functools

import numpy as np

import jax
import jax.numpy as jnp
from jax import lax
from jax.experimental import pallas as pl
from jax.experimental.pallas import tpu as pltpu

EPS = 1e-5


# ----------------------------------------------------------------------------
# Fused MainBl kernel
# ----------------------------------------------------------------------------
def _mainbl_kernel(x_ref, a_in_ref, a_mid_ref, ku_ref, kd_ref,
                   g1_ref, b1_ref, g2_ref, b2_ref, g3_ref, b3_ref,
                   gs_ref, bs_ref,
                   w1_ref, c1_ref, w2_ref, c2_ref, w3s_ref, c3s_ref,
                   o_ref):
    x = x_ref[...]                        # (R, W*Cin) f32, R = N*H
    inv_r = 1.0 / x.shape[0]
    keep_up = ku_ref[...]                 # (R, 1): 0.0 at the first row of each image
    keep_dn = kd_ref[...]                 # (R, 1): 0.0 at the last  row of each image
    a_in = a_in_ref[...]                  # (W*Cin, W*Cin) channel-averaging matrix
    a_mid = a_mid_ref[...]                # (W*Cmid, W*Cmid)

    def bn_stats(t, a_mat):
        """Per-channel mean / biased var, broadcast back onto the packed (w,c) lanes."""
        s = jnp.concatenate([jnp.sum(t, axis=0, keepdims=True),
                             jnp.sum(t * t, axis=0, keepdims=True)],
                            axis=0) * inv_r                        # (2, W*C)
        s = jnp.dot(s, a_mat, preferred_element_type=jnp.float32)  # avg over W groups
        mean = s[0:1]
        var = s[1:2] - mean * mean                                 # single-pass stats
        return mean, var

    def bn_relu(t, mean, var, gamma, beta):
        return jnp.maximum((t - mean) * (gamma * lax.rsqrt(var + EPS)) + beta, 0.0)

    def taps(t):
        """(R, W*C) -> (R, 3*W*C): rows shifted by -1/0/+1 (zero at image
        boundaries), concatenated on the lane axis to match the packed weights."""
        zrow = jnp.zeros_like(t[:1])
        up = jnp.concatenate([zrow, t[:-1]], axis=0) * keep_up
        dn = jnp.concatenate([t[1:], zrow], axis=0) * keep_dn
        return jnp.concatenate([up, t, dn], axis=-1)

    def conv(cols, w_ref, bias):
        # bf16 operands, f32 accumulation; SAME padding along W folded into w_ref.
        return jnp.dot(cols.astype(jnp.bfloat16), w_ref[...],
                       preferred_element_type=jnp.float32) + bias

    # SA1 and the skip SA normalize the same input -> compute stats once.
    mx, vx = bn_stats(x, a_in)

    y1 = bn_relu(x, mx, vx, g1_ref[...], b1_ref[...])             # SA1 + relu
    out2 = conv(taps(y1), w1_ref, c1_ref[...])                    # conv1 -> (R, W*Cmid)

    m2, v2 = bn_stats(out2, a_mid)
    y2 = bn_relu(out2, m2, v2, g2_ref[...], b2_ref[...])          # SA2 + relu
    out4 = conv(taps(y2), w2_ref, c2_ref[...])                    # conv2 -> (R, W*Cmid)

    m4, v4 = bn_stats(out4, a_mid)
    y3 = bn_relu(out4, m4, v4, g3_ref[...], b3_ref[...])          # SA3 + relu
    ys = bn_relu(x, mx, vx, gs_ref[...], bs_ref[...])             # skip SA + relu

    # conv3 + skip conv fused: one MXU matmul directly yields resbl_out + skip_out.
    cols = jnp.concatenate([taps(y3), taps(ys)], axis=-1)         # (R, 3*W*(Cmid+Cin))
    final = conv(cols, w3s_ref, c3s_ref[...])                     # (R, W*Cout)

    o_ref[...] = final                    # single unmasked lane-dense store


# ----------------------------------------------------------------------------
# Wrapper-side packing helpers (all static / XLA, outside the kernel)
# ----------------------------------------------------------------------------
def _pack_conv(w_hwio, bias, width, dtype=jnp.bfloat16):
    """3x3 HWIO conv weight -> (3*width*Cin, width*Cout) matrix.

    SAME padding along the width axis is folded into the matrix; the three
    vertical taps are stacked along K in the same [up, same, down] order as
    the kernel's taps().  Bias is tiled to the packed (w, cout) lane layout."""
    _, _, ci, co = w_hwio.shape
    sel = np.zeros((3, width, width), np.float32)      # sel[kx, w_in, w_out]
    for kx in range(3):
        for wo in range(width):
            wi = wo + kx - 1
            if 0 <= wi < width:
                sel[kx, wi, wo] = 1.0
    packed = jnp.einsum('xpw,yxio->ypiwo', jnp.asarray(sel),
                        w_hwio.astype(jnp.float32))
    packed = packed.reshape(3 * width * ci, width * co).astype(dtype)
    bias_p = jnp.tile(bias.astype(jnp.float32), width).reshape(1, width * co)
    return packed, bias_p


def _pack_bn(gamma, beta, width):
    c = gamma.shape[0]
    return (jnp.tile(gamma.astype(jnp.float32), width).reshape(1, width * c),
            jnp.tile(beta.astype(jnp.float32), width).reshape(1, width * c))


def _avg_matrix(width, c):
    """(width*c, width*c) matrix so that (row_mean) @ A = per-channel mean,
    replicated at every packed (w, c) lane position."""
    idx = np.arange(width * c)
    a = (idx[:, None] % c == idx[None, :] % c).astype(np.float32) / width
    return jnp.asarray(a)


def mainbl_forward(params, x_nchw):
    n, cin, h, w = x_nchw.shape
    cmid = params["conv1"][0].shape[-1]
    cout = params["conv3"][0].shape[-1]

    w1, c1 = _pack_conv(*params["conv1"], w)
    w2, c2 = _pack_conv(*params["conv2"], w)
    w3, c3 = _pack_conv(*params["conv3"], w)
    ws, cs = _pack_conv(*params["conv"], w)
    # conv3 + skip conv fused into one matmul: stack along K, pre-add biases.
    w3s = jnp.concatenate([w3, ws], axis=0)            # (3*W*(Cmid+Cin), W*Cout)
    c3s = c3 + cs

    g1, b1 = _pack_bn(*params["SA1"], w)
    g2, b2 = _pack_bn(*params["SA2"], w)
    g3, b3 = _pack_bn(*params["SA3"], w)
    gs, bs = _pack_bn(*params["SA"], w)

    a_in = _avg_matrix(w, cin)
    a_mid = _avg_matrix(w, cmid)

    # Image-boundary keep-masks for the vertical conv taps.
    ridx = np.arange(n * h)
    keep_up = jnp.asarray((ridx % h != 0).astype(np.float32).reshape(n * h, 1))
    keep_dn = jnp.asarray((ridx % h != h - 1).astype(np.float32).reshape(n * h, 1))

    # NCHW -> lane-dense (N*H, W*Cin): channels packed with W on the lane axis.
    x2d = jnp.transpose(x_nchw, (0, 2, 3, 1)).reshape(n * h, w * cin)
    x2d = x2d.astype(jnp.float32)

    inputs = (x2d, a_in, a_mid, keep_up, keep_dn,
              g1, b1, g2, b2, g3, b3, gs, bs,
              w1, c1, w2, c2, w3s, c3s)
    in_specs = [pl.BlockSpec(a.shape, lambda i: (0, 0)) for a in inputs]

    out = pl.pallas_call(
        _mainbl_kernel,
        out_shape=jax.ShapeDtypeStruct((n * h, w * cout), jnp.float32),
        grid=(1,),
        in_specs=in_specs,
        out_specs=pl.BlockSpec((n * h, w * cout), lambda i: (0, 0)),
        compiler_params=pltpu.CompilerParams(
            dimension_semantics=("arbitrary",)),
    )(*inputs)

    # Lane-dense (N*H, W*Cout) -> NCHW to match the PyTorch module's output.
    return jnp.transpose(out.reshape(n, h, w, cout), (0, 3, 1, 2))


# ----------------------------------------------------------------------------
# Parameters
# ----------------------------------------------------------------------------
def init_mainbl_params(key, in_size, out_size):
    mid = (in_size + out_size) // 2
    ks = jax.random.split(key, 8)

    def conv_p(k, ci, co):
        kw, kb = jax.random.split(k)
        w = 0.1 * jax.random.normal(kw, (3, 3, ci, co), jnp.float32)   # HWIO
        b = 0.05 * jax.random.normal(kb, (co,), jnp.float32)
        return w, b

    def bn_p(k, c):
        kg, kb = jax.random.split(k)
        gamma = 1.0 + 0.1 * jax.random.normal(kg, (c,), jnp.float32)
        beta = 0.1 * jax.random.normal(kb, (c,), jnp.float32)
        return gamma, beta

    return {
        "conv1": conv_p(ks[0], in_size, mid),
        "conv2": conv_p(ks[1], mid, mid),
        "conv3": conv_p(ks[2], mid, out_size),
        "conv": conv_p(ks[3], in_size, out_size),
        "SA1": bn_p(ks[4], in_size),
        "SA2": bn_p(ks[5], mid),
        "SA3": bn_p(ks[6], mid),
        "SA": bn_p(ks[7], in_size),
    }


# ----------------------------------------------------------------------------
# Pure-JAX reference (for correctness check)
# ----------------------------------------------------------------------------
def _ref_bn_relu_conv(x, gamma, beta, w, b):
    mean = jnp.mean(x, axis=(0, 1, 2))
    var = jnp.var(x, axis=(0, 1, 2))
    y = (x - mean) / jnp.sqrt(var + EPS) * gamma + beta
    y = jnp.maximum(y, 0.0)
    out = lax.conv_general_dilated(
        y, w, window_strides=(1, 1), padding="SAME",
        dimension_numbers=("NHWC", "HWIO", "NHWC"))
    return out + b


def mainbl_reference(params, x_nchw):
    x = jnp.transpose(x_nchw, (0, 2, 3, 1)).astype(jnp.float32)
    g1, b1 = params["SA1"]; w1, c1 = params["conv1"]
    out2 = _ref_bn_relu_conv(x, g1, b1, w1, c1)
    g2, b2 = params["SA2"]; w2, c2 = params["conv2"]
    out4 = _ref_bn_relu_conv(out2, g2, b2, w2, c2)
    g3, b3 = params["SA3"]; w3, c3 = params["conv3"]
    out6 = _ref_bn_relu_conv(out4, g3, b3, w3, c3)
    gm, bm = params["SA"]; wm, cm = params["conv"]
    out3 = _ref_bn_relu_conv(x, gm, bm, wm, cm)
    return jnp.transpose(out6 + out3, (0, 3, 1, 2))


if __name__ == "__main__":
    key = jax.random.PRNGKey(0)
    kx, kp = jax.random.split(key)

    in_size, out_size = 4, 8
    N, H, W = 2, 16, 16

    x = jax.random.normal(kx, (N, in_size, H, W), jnp.float32)
    params = init_mainbl_params(kp, in_size, out_size)

    fwd = jax.jit(functools.partial(mainbl_forward, params))
    y = jax.block_until_ready(fwd(x))

    y_ref = mainbl_reference(params, x)
    assert y.shape == (N, out_size, H, W), y.shape
    max_err = float(jnp.max(jnp.abs(y - y_ref)))
    # bf16 MXU operands (f32 accumulation) vs an all-f32 reference -> relaxed
    # tolerance; measured error is well inside this budget.
    assert jnp.allclose(y, y_ref, atol=2e-2, rtol=2e-2), max_err

    print("KERNEL_OK")
</pallas_src>

<mosaic_0001>
module attributes {stable_mosaic.version = 11 : i64} {
  func.func @_mainbl_kernel(%arg0: i32, %arg1: memref<32x64xf32, #tpu.memory_space<vmem>>, %arg2: memref<64x64xf32, #tpu.memory_space<vmem>>, %arg3: memref<96x96xf32, #tpu.memory_space<vmem>>, %arg4: memref<32x1xf32, #tpu.memory_space<vmem>>, %arg5: memref<32x1xf32, #tpu.memory_space<vmem>>, %arg6: memref<1x64xf32, #tpu.memory_space<vmem>>, %arg7: memref<1x64xf32, #tpu.memory_space<vmem>>, %arg8: memref<1x96xf32, #tpu.memory_space<vmem>>, %arg9: memref<1x96xf32, #tpu.memory_space<vmem>>, %arg10: memref<1x96xf32, #tpu.memory_space<vmem>>, %arg11: memref<1x96xf32, #tpu.memory_space<vmem>>, %arg12: memref<1x64xf32, #tpu.memory_space<vmem>>, %arg13: memref<1x64xf32, #tpu.memory_space<vmem>>, %arg14: memref<192x96xbf16, #tpu.memory_space<vmem>>, %arg15: memref<1x96xf32, #tpu.memory_space<vmem>>, %arg16: memref<288x96xbf16, #tpu.memory_space<vmem>>, %arg17: memref<1x96xf32, #tpu.memory_space<vmem>>, %arg18: memref<480x128xbf16, #tpu.memory_space<vmem>>, %arg19: memref<1x128xf32, #tpu.memory_space<vmem>>, %arg20: memref<32x128xf32, #tpu.memory_space<vmem>>) attributes {dimension_semantics = [#tpu.dimension_semantics<arbitrary>], iteration_bounds = array<i64: 1>, scalar_prefetch = 0 : i64, scratch_operands = 0 : i64, tpu.core_type = #tpu.core_type<tc>, window_params = [{pipeline_mode = #tpu.pipeline_mode<synchronous>, transform_indices = @transform_0, window_bounds = array<i64: 32, 64>}, {pipeline_mode = #tpu.pipeline_mode<synchronous>, transform_indices = @transform_1, window_bounds = array<i64: 64, 64>}, {pipeline_mode = #tpu.pipeline_mode<synchronous>, transform_indices = @transform_2, window_bounds = array<i64: 96, 96>}, {pipeline_mode = #tpu.pipeline_mode<synchronous>, transform_indices = @transform_3, window_bounds = array<i64: 32, 1>}, {pipeline_mode = #tpu.pipeline_mode<synchronous>, transform_indices = @transform_4, window_bounds = array<i64: 32, 1>}, {pipeline_mode = #tpu.pipeline_mode<synchronous>, transform_indices = @transform_5, window_bounds = array<i64: 1, 64>}, {pipeline_mode = #tpu.pipeline_mode<synchronous>, transform_indices = @transform_6, window_bounds = array<i64: 1, 64>}, {pipeline_mode = #tpu.pipeline_mode<synchronous>, transform_indices = @transform_7, window_bounds = array<i64: 1, 96>}, {pipeline_mode = #tpu.pipeline_mode<synchronous>, transform_indices = @transform_8, window_bounds = array<i64: 1, 96>}, {pipeline_mode = #tpu.pipeline_mode<synchronous>, transform_indices = @transform_9, window_bounds = array<i64: 1, 96>}, {pipeline_mode = #tpu.pipeline_mode<synchronous>, transform_indices = @transform_10, window_bounds = array<i64: 1, 96>}, {pipeline_mode = #tpu.pipeline_mode<synchronous>, transform_indices = @transform_11, window_bounds = array<i64: 1, 64>}, {pipeline_mode = #tpu.pipeline_mode<synchronous>, transform_indices = @transform_12, window_bounds = array<i64: 1, 64>}, {pipeline_mode = #tpu.pipeline_mode<synchronous>, transform_indices = @transform_13, window_bounds = array<i64: 192, 96>}, {pipeline_mode = #tpu.pipeline_mode<synchronous>, transform_indices = @transform_14, window_bounds = array<i64: 1, 96>}, {pipeline_mode = #tpu.pipeline_mode<synchronous>, transform_indices = @transform_15, window_bounds = array<i64: 288, 96>}, {pipeline_mode = #tpu.pipeline_mode<synchronous>, transform_indices = @transform_16, window_bounds = array<i64: 1, 96>}, {pipeline_mode = #tpu.pipeline_mode<synchronous>, transform_indices = @transform_17, window_bounds = array<i64: 480, 128>}, {pipeline_mode = #tpu.pipeline_mode<synchronous>, transform_indices = @transform_18, window_bounds = array<i64: 1, 128>}, {pipeline_mode = #tpu.pipeline_mode<synchronous>, transform_indices = @transform_19, window_bounds = array<i64: 32, 128>}]} {
    %c0 = arith.constant 0 : index
    %c0_0 = arith.constant 0 : index
    %0 = vector.load %arg1[%c0, %c0_0] : memref<32x64xf32, #tpu.memory_space<vmem>>, vector<32x64xf32>
    %c0_1 = arith.constant 0 : index
    %c0_2 = arith.constant 0 : index
    %1 = vector.load %arg4[%c0_1, %c0_2] : memref<32x1xf32, #tpu.memory_space<vmem>>, vector<32x1xf32>
    %c0_3 = arith.constant 0 : index
    %c0_4 = arith.constant 0 : index
    %2 = vector.load %arg5[%c0_3, %c0_4] : memref<32x1xf32, #tpu.memory_space<vmem>>, vector<32x1xf32>
    %c0_5 = arith.constant 0 : index
    %c0_6 = arith.constant 0 : index
    %3 = vector.load %arg2[%c0_5, %c0_6] : memref<64x64xf32, #tpu.memory_space<vmem>>, vector<64x64xf32>
    %c0_7 = arith.constant 0 : index
    %c0_8 = arith.constant 0 : index
    %4 = vector.load %arg3[%c0_7, %c0_8] : memref<96x96xf32, #tpu.memory_space<vmem>>, vector<96x96xf32>
    %cst = arith.constant dense<0.000000e+00> : vector<64xf32>
    %5 = vector.multi_reduction <add>, %0, %cst [0] : vector<32x64xf32> to vector<64xf32>
    %6 = vector.shape_cast %5 : vector<64xf32> to vector<1x64xf32>
    %7 = arith.mulf %0, %0 : vector<32x64xf32>
    %cst_9 = arith.constant dense<0.000000e+00> : vector<64xf32>
    %8 = vector.multi_reduction <add>, %7, %cst_9 [0] : vector<32x64xf32> to vector<64xf32>
    %9 = vector.shape_cast %8 : vector<64xf32> to vector<1x64xf32>
    %10 = tpu.concatenate %6, %9 in 0 : vector<1x64xf32>, vector<1x64xf32> -> vector<2x64xf32>
    %cst_10 = arith.constant 3.125000e-02 : f32
    %11 = vector.broadcast %cst_10 : f32 to vector<2x64xf32>
    %12 = arith.mulf %10, %11 : vector<2x64xf32>
    %cst_11 = arith.constant dense<0.000000e+00> : vector<2x64xf32>
    %13 = tpu.matmul %12, %3, %cst_11 {dimension_numbers = #tpu.dot_dimension_numbers<[1], [0], [0], [1], [0, 0, 1, 1], [], []>} : vector<2x64xf32>, vector<64x64xf32>, vector<2x64xf32> -> vector<2x64xf32>
    %14 = vector.extract_strided_slice %13 {offsets = [0, 0], sizes = [1, 64], strides = [1, 1]} : vector<2x64xf32> to vector<1x64xf32>
    %15 = vector.extract_strided_slice %13 {offsets = [1, 0], sizes = [1, 64], strides = [1, 1]} : vector<2x64xf32> to vector<1x64xf32>
    %16 = arith.mulf %14, %14 : vector<1x64xf32>
    %17 = arith.subf %15, %16 : vector<1x64xf32>
    %c0_12 = arith.constant 0 : index
    %c0_13 = arith.constant 0 : index
    %18 = vector.load %arg6[%c0_12, %c0_13] : memref<1x64xf32, #tpu.memory_space<vmem>>, vector<1x64xf32>
    %c0_14 = arith.constant 0 : index
    %c0_15 = arith.constant 0 : index
    %19 = vector.load %arg7[%c0_14, %c0_15] : memref<1x64xf32, #tpu.memory_space<vmem>>, vector<1x64xf32>
    %20 = vector.broadcast %14 : vector<1x64xf32> to vector<32x64xf32>
    %21 = arith.subf %0, %20 : vector<32x64xf32>
    %cst_16 = arith.constant 9.99999974E-6 : f32
    %22 = vector.broadcast %cst_16 : f32 to vector<1x64xf32>
    %23 = arith.addf %17, %22 : vector<1x64xf32>
    %24 = math.rsqrt %23 : vector<1x64xf32>
    %25 = arith.mulf %18, %24 : vector<1x64xf32>
    %26 = vector.broadcast %25 : vector<1x64xf32> to vector<32x64xf32>
    %27 = arith.mulf %21, %26 : vector<32x64xf32>
    %28 = vector.broadcast %19 : vector<1x64xf32> to vector<32x64xf32>
    %29 = arith.addf %27, %28 : vector<32x64xf32>
    %cst_17 = arith.constant 0.000000e+00 : f32
    %30 = vector.broadcast %cst_17 : f32 to vector<32x64xf32>
    %31 = arith.maximumf %29, %30 : vector<32x64xf32>
    %cst_18 = arith.constant 0.000000e+00 : f32
    %32 = vector.broadcast %cst_18 : f32 to vector<1x64xf32>
    %33 = vector.extract_strided_slice %31 {offsets = [0, 0], sizes = [31, 64], strides = [1, 1]} : vector<32x64xf32> to vector<31x64xf32>
    %34 = tpu.concatenate %32, %33 in 0 : vector<1x64xf32>, vector<31x64xf32> -> vector<32x64xf32>
    %35 = vector.broadcast %1 : vector<32x1xf32> to vector<32x64xf32>
    %36 = arith.mulf %34, %35 : vector<32x64xf32>
    %37 = vector.extract_strided_slice %31 {offsets = [1, 0], sizes = [31, 64], strides = [1, 1]} : vector<32x64xf32> to vector<31x64xf32>
    %38 = tpu.concatenate %37, %32 in 0 : vector<31x64xf32>, vector<1x64xf32> -> vector<32x64xf32>
    %39 = vector.broadcast %2 : vector<32x1xf32> to vector<32x64xf32>
    %40 = arith.mulf %38, %39 : vector<32x64xf32>
    %41 = tpu.concatenate %36, %31, %40 in 1 : vector<32x64xf32>, vector<32x64xf32>, vector<32x64xf32> -> vector<32x192xf32>
    %c0_19 = arith.constant 0 : index
    %c0_20 = arith.constant 0 : index
    %42 = vector.load %arg15[%c0_19, %c0_20] : memref<1x96xf32, #tpu.memory_space<vmem>>, vector<1x96xf32>
    %43 = arith.truncf %41 : vector<32x192xf32> to vector<32x192xbf16>
    %c0_21 = arith.constant 0 : index
    %c0_22 = arith.constant 0 : index
    %44 = vector.load %arg14[%c0_21, %c0_22] : memref<192x96xbf16, #tpu.memory_space<vmem>>, vector<192x96xbf16>
    %cst_23 = arith.constant dense<0.000000e+00> : vector<32x96xf32>
    %45 = tpu.matmul %43, %44, %cst_23 {dimension_numbers = #tpu.dot_dimension_numbers<[1], [0], [0], [1], [0, 0, 1, 1], [], []>} : vector<32x192xbf16>, vector<192x96xbf16>, vector<32x96xf32> -> vector<32x96xf32>
    %46 = vector.broadcast %42 : vector<1x96xf32> to vector<32x96xf32>
    %47 = arith.addf %45, %46 : vector<32x96xf32>
    %cst_24 = arith.constant dense<0.000000e+00> : vector<96xf32>
    %48 = vector.multi_reduction <add>, %47, %cst_24 [0] : vector<32x96xf32> to vector<96xf32>
    %49 = vector.shape_cast %48 : vector<96xf32> to vector<1x96xf32>
    %50 = arith.mulf %47, %47 : vector<32x96xf32>
    %cst_25 = arith.constant dense<0.000000e+00> : vector<96xf32>
    %51 = vector.multi_reduction <add>, %50, %cst_25 [0] : vector<32x96xf32> to vector<96xf32>
    %52 = vector.shape_cast %51 : vector<96xf32> to vector<1x96xf32>
    %53 = tpu.concatenate %49, %52 in 0 : vector<1x96xf32>, vector<1x96xf32> -> vector<2x96xf32>
    %cst_26 = arith.constant 3.125000e-02 : f32
    %54 = vector.broadcast %cst_26 : f32 to vector<2x96xf32>
    %55 = arith.mulf %53, %54 : vector<2x96xf32>
    %cst_27 = arith.constant dense<0.000000e+00> : vector<2x96xf32>
    %56 = tpu.matmul %55, %4, %cst_27 {dimension_numbers = #tpu.dot_dimension_numbers<[1], [0], [0], [1], [0, 0, 1, 1], [], []>} : vector<2x96xf32>, vector<96x96xf32>, vector<2x96xf32> -> vector<2x96xf32>
    %57 = vector.extract_strided_slice %56 {offsets = [0, 0], sizes = [1, 96], strides = [1, 1]} : vector<2x96xf32> to vector<1x96xf32>
    %58 = vector.extract_strided_slice %56 {offsets = [1, 0], sizes = [1, 96], strides = [1, 1]} : vector<2x96xf32> to vector<1x96xf32>
    %59 = arith.mulf %57, %57 : vector<1x96xf32>
    %60 = arith.subf %58, %59 : vector<1x96xf32>
    %c0_28 = arith.constant 0 : index
    %c0_29 = arith.constant 0 : index
    %61 = vector.load %arg8[%c0_28, %c0_29] : memref<1x96xf32, #tpu.memory_space<vmem>>, vector<1x96xf32>
    %c0_30 = arith.constant 0 : index
    %c0_31 = arith.constant 0 : index
    %62 = vector.load %arg9[%c0_30, %c0_31] : memref<1x96xf32, #tpu.memory_space<vmem>>, vector<1x96xf32>
    %63 = vector.broadcast %57 : vector<1x96xf32> to vector<32x96xf32>
    %64 = arith.subf %47, %63 : vector<32x96xf32>
    %cst_32 = arith.constant 9.99999974E-6 : f32
    %65 = vector.broadcast %cst_32 : f32 to vector<1x96xf32>
    %66 = arith.addf %60, %65 : vector<1x96xf32>
    %67 = math.rsqrt %66 : vector<1x96xf32>
    %68 = arith.mulf %61, %67 : vector<1x96xf32>
    %69 = vector.broadcast %68 : vector<1x96xf32> to vector<32x96xf32>
    %70 = arith.mulf %64, %69 : vector<32x96xf32>
    %71 = vector.broadcast %62 : vector<1x96xf32> to vector<32x96xf32>
    %72 = arith.addf %70, %71 : vector<32x96xf32>
    %cst_33 = arith.constant 0.000000e+00 : f32
    %73 = vector.broadcast %cst_33 : f32 to vector<32x96xf32>
    %74 = arith.maximumf %72, %73 : vector<32x96xf32>
    %cst_34 = arith.constant 0.000000e+00 : f32
    %75 = vector.broadcast %cst_34 : f32 to vector<1x96xf32>
    %76 = vector.extract_strided_slice %74 {offsets = [0, 0], sizes = [31, 96], strides = [1, 1]} : vector<32x96xf32> to vector<31x96xf32>
    %77 = tpu.concatenate %75, %76 in 0 : vector<1x96xf32>, vector<31x96xf32> -> vector<32x96xf32>
    %78 = vector.broadcast %1 : vector<32x1xf32> to vector<32x96xf32>
    %79 = arith.mulf %77, %78 : vector<32x96xf32>
    %80 = vector.extract_strided_slice %74 {offsets = [1, 0], sizes = [31, 96], strides = [1, 1]} : vector<32x96xf32> to vector<31x96xf32>
    %81 = tpu.concatenate %80, %75 in 0 : vector<31x96xf32>, vector<1x96xf32> -> vector<32x96xf32>
    %82 = vector.broadcast %2 : vector<32x1xf32> to vector<32x96xf32>
    %83 = arith.mulf %81, %82 : vector<32x96xf32>
    %84 = tpu.concatenate %79, %74, %83 in 1 : vector<32x96xf32>, vector<32x96xf32>, vector<32x96xf32> -> vector<32x288xf32>
    %c0_35 = arith.constant 0 : index
    %c0_36 = arith.constant 0 : index
    %85 = vector.load %arg17[%c0_35, %c0_36] : memref<1x96xf32, #tpu.memory_space<vmem>>, vector<1x96xf32>
    %86 = arith.truncf %84 : vector<32x288xf32> to vector<32x288xbf16>
    %c0_37 = arith.constant 0 : index
    %c0_38 = arith.constant 0 : index
    %87 = vector.load %arg16[%c0_37, %c0_38] : memref<288x96xbf16, #tpu.memory_space<vmem>>, vector<288x96xbf16>
    %cst_39 = arith.constant dense<0.000000e+00> : vector<32x96xf32>
    %88 = tpu.matmul %86, %87, %cst_39 {dimension_numbers = #tpu.dot_dimension_numbers<[1], [0], [0], [1], [0, 0, 1, 1], [], []>} : vector<32x288xbf16>, vector<288x96xbf16>, vector<32x96xf32> -> vector<32x96xf32>
    %89 = vector.broadcast %85 : vector<1x96xf32> to vector<32x96xf32>
    %90 = arith.addf %88, %89 : vector<32x96xf32>
    %cst_40 = arith.constant dense<0.000000e+00> : vector<96xf32>
    %91 = vector.multi_reduction <add>, %90, %cst_40 [0] : vector<32x96xf32> to vector<96xf32>
    %92 = vector.shape_cast %91 : vector<96xf32> to vector<1x96xf32>
    %93 = arith.mulf %90, %90 : vector<32x96xf32>
    %cst_41 = arith.constant dense<0.000000e+00> : vector<96xf32>
    %94 = vector.multi_reduction <add>, %93, %cst_41 [0] : vector<32x96xf32> to vector<96xf32>
    %95 = vector.shape_cast %94 : vector<96xf32> to vector<1x96xf32>
    %96 = tpu.concatenate %92, %95 in 0 : vector<1x96xf32>, vector<1x96xf32> -> vector<2x96xf32>
    %cst_42 = arith.constant 3.125000e-02 : f32
    %97 = vector.broadcast %cst_42 : f32 to vector<2x96xf32>
    %98 = arith.mulf %96, %97 : vector<2x96xf32>
    %cst_43 = arith.constant dense<0.000000e+00> : vector<2x96xf32>
    %99 = tpu.matmul %98, %4, %cst_43 {dimension_numbers = #tpu.dot_dimension_numbers<[1], [0], [0], [1], [0, 0, 1, 1], [], []>} : vector<2x96xf32>, vector<96x96xf32>, vector<2x96xf32> -> vector<2x96xf32>
    %100 = vector.extract_strided_slice %99 {offsets = [0, 0], sizes = [1, 96], strides = [1, 1]} : vector<2x96xf32> to vector<1x96xf32>
    %101 = vector.extract_strided_slice %99 {offsets = [1, 0], sizes = [1, 96], strides = [1, 1]} : vector<2x96xf32> to vector<1x96xf32>
    %102 = arith.mulf %100, %100 : vector<1x96xf32>
    %103 = arith.subf %101, %102 : vector<1x96xf32>
    %c0_44 = arith.constant 0 : index
    %c0_45 = arith.constant 0 : index
    %104 = vector.load %arg10[%c0_44, %c0_45] : memref<1x96xf32, #tpu.memory_space<vmem>>, vector<1x96xf32>
    %c0_46 = arith.constant 0 : index
    %c0_47 = arith.constant 0 : index
    %105 = vector.load %arg11[%c0_46, %c0_47] : memref<1x96xf32, #tpu.memory_space<vmem>>, vector<1x96xf32>
    %106 = vector.broadcast %100 : vector<1x96xf32> to vector<32x96xf32>
    %107 = arith.subf %90, %106 : vector<32x96xf32>
    %cst_48 = arith.constant 9.99999974E-6 : f32
    %108 = vector.broadcast %cst_48 : f32 to vector<1x96xf32>
    %109 = arith.addf %103, %108 : vector<1x96xf32>
    %110 = math.rsqrt %109 : vector<1x96xf32>
    %111 = arith.mulf %104, %110 : vector<1x96xf32>
    %112 = vector.broadcast %111 : vector<1x96xf32> to vector<32x96xf32>
    %113 = arith.mulf %107, %112 : vector<32x96xf32>
    %114 = vector.broadcast %105 : vector<1x96xf32> to vector<32x96xf32>
    %115 = arith.addf %113, %114 : vector<32x96xf32>
    %cst_49 = arith.constant 0.000000e+00 : f32
    %116 = vector.broadcast %cst_49 : f32 to vector<32x96xf32>
    %117 = arith.maximumf %115, %116 : vector<32x96xf32>
    %c0_50 = arith.constant 0 : index
    %c0_51 = arith.constant 0 : index
    %118 = vector.load %arg12[%c0_50, %c0_51] : memref<1x64xf32, #tpu.memory_space<vmem>>, vector<1x64xf32>
    %c0_52 = arith.constant 0 : index
    %c0_53 = arith.constant 0 : index
    %119 = vector.load %arg13[%c0_52, %c0_53] : memref<1x64xf32, #tpu.memory_space<vmem>>, vector<1x64xf32>
    %120 = vector.broadcast %14 : vector<1x64xf32> to vector<32x64xf32>
    %121 = arith.subf %0, %120 : vector<32x64xf32>
    %cst_54 = arith.constant 9.99999974E-6 : f32
    %122 = vector.broadcast %cst_54 : f32 to vector<1x64xf32>
    %123 = arith.addf %17, %122 : vector<1x64xf32>
    %124 = math.rsqrt %123 : vector<1x64xf32>
    %125 = arith.mulf %118, %124 : vector<1x64xf32>
    %126 = vector.broadcast %125 : vector<1x64xf32> to vector<32x64xf32>
    %127 = arith.mulf %121, %126 : vector<32x64xf32>
    %128 = vector.broadcast %119 : vector<1x64xf32> to vector<32x64xf32>
    %129 = arith.addf %127, %128 : vector<32x64xf32>
    %cst_55 = arith.constant 0.000000e+00 : f32
    %130 = vector.broadcast %cst_55 : f32 to vector<32x64xf32>
    %131 = arith.maximumf %129, %130 : vector<32x64xf32>
    %cst_56 = arith.constant 0.000000e+00 : f32
    %132 = vector.broadcast %cst_56 : f32 to vector<1x96xf32>
    %133 = vector.extract_strided_slice %117 {offsets = [0, 0], sizes = [31, 96], strides = [1, 1]} : vector<32x96xf32> to vector<31x96xf32>
    %134 = tpu.concatenate %132, %133 in 0 : vector<1x96xf32>, vector<31x96xf32> -> vector<32x96xf32>
    %135 = vector.broadcast %1 : vector<32x1xf32> to vector<32x96xf32>
    %136 = arith.mulf %134, %135 : vector<32x96xf32>
    %137 = vector.extract_strided_slice %117 {offsets = [1, 0], sizes = [31, 96], strides = [1, 1]} : vector<32x96xf32> to vector<31x96xf32>
    %138 = tpu.concatenate %137, %132 in 0 : vector<31x96xf32>, vector<1x96xf32> -> vector<32x96xf32>
    %139 = vector.broadcast %2 : vector<32x1xf32> to vector<32x96xf32>
    %140 = arith.mulf %138, %139 : vector<32x96xf32>
    %141 = tpu.concatenate %136, %117, %140 in 1 : vector<32x96xf32>, vector<32x96xf32>, vector<32x96xf32> -> vector<32x288xf32>
    %cst_57 = arith.constant 0.000000e+00 : f32
    %142 = vector.broadcast %cst_57 : f32 to vector<1x64xf32>
    %143 = vector.extract_strided_slice %131 {offsets = [0, 0], sizes = [31, 64], strides = [1, 1]} : vector<32x64xf32> to vector<31x64xf32>
    %144 = tpu.concatenate %142, %143 in 0 : vector<1x64xf32>, vector<31x64xf32> -> vector<32x64xf32>
    %145 = vector.broadcast %1 : vector<32x1xf32> to vector<32x64xf32>
    %146 = arith.mulf %144, %145 : vector<32x64xf32>
    %147 = vector.extract_strided_slice %131 {offsets = [1, 0], sizes = [31, 64], strides = [1, 1]} : vector<32x64xf32> to vector<31x64xf32>
    %148 = tpu.concatenate %147, %142 in 0 : vector<31x64xf32>, vector<1x64xf32> -> vector<32x64xf32>
    %149 = vector.broadcast %2 : vector<32x1xf32> to vector<32x64xf32>
    %150 = arith.mulf %148, %149 : vector<32x64xf32>
    %151 = tpu.concatenate %146, %131, %150 in 1 : vector<32x64xf32>, vector<32x64xf32>, vector<32x64xf32> -> vector<32x192xf32>
    %152 = tpu.concatenate %141, %151 in 1 : vector<32x288xf32>, vector<32x192xf32> -> vector<32x480xf32>
    %c0_58 = arith.constant 0 : index
    %c0_59 = arith.constant 0 : index
    %153 = vector.load %arg19[%c0_58, %c0_59] : memref<1x128xf32, #tpu.memory_space<vmem>>, vector<1x128xf32>
    %154 = arith.truncf %152 : vector<32x480xf32> to vector<32x480xbf16>
    %c0_60 = arith.constant 0 : index
    %c0_61 = arith.constant 0 : index
    %155 = vector.load %arg18[%c0_60, %c0_61] : memref<480x128xbf16, #tpu.memory_space<vmem>>, vector<480x128xbf16>
    %cst_62 = arith.constant dense<0.000000e+00> : vector<32x128xf32>
    %156 = tpu.matmul %154, %155, %cst_62 {dimension_numbers = #tpu.dot_dimension_numbers<[1], [0], [0], [1], [0, 0, 1, 1], [], []>} : vector<32x480xbf16>, vector<480x128xbf16>, vector<32x128xf32> -> vector<32x128xf32>
    %157 = vector.broadcast %153 : vector<1x128xf32> to vector<32x128xf32>
    %158 = arith.addf %156, %157 : vector<32x128xf32>
    %c0_63 = arith.constant 0 : index
    %c0_64 = arith.constant 0 : index
    %159 = vector.load %arg20[%c0_63, %c0_64] : memref<32x128xf32, #tpu.memory_space<vmem>>, vector<32x128xf32>
    tpu.vector_store %arg20[%c0_63, %c0_64], %158 {strides = array<i32>} : memref<32x128xf32, #tpu.memory_space<vmem>>, vector<32x128xf32>,
    return
  }
  func.func @transform_0(%arg0: i32) -> (i32, i32) {
    %c0_i32 = arith.constant 0 : i32
    %c0_i32_0 = arith.constant 0 : i32
    %c0_i32_1 = arith.constant 0 : i32
    return %c0_i32, %c0_i32_0 : i32, i32
  }
  func.func @transform_1(%arg0: i32) -> (i32, i32) {
    %c0_i32 = arith.constant 0 : i32
    %c0_i32_0 = arith.constant 0 : i32
    %c0_i32_1 = arith.constant 0 : i32
    return %c0_i32, %c0_i32_0 : i32, i32
  }
  func.func @transform_2(%arg0: i32) -> (i32, i32) {
    %c0_i32 = arith.constant 0 : i32
    %c0_i32_0 = arith.constant 0 : i32
    %c0_i32_1 = arith.constant 0 : i32
    return %c0_i32, %c0_i32_0 : i32, i32
  }
  func.func @transform_3(%arg0: i32) -> (i32, i32) {
    %c0_i32 = arith.constant 0 : i32
    %c0_i32_0 = arith.constant 0 : i32
    %c0_i32_1 = arith.constant 0 : i32
    return %c0_i32, %c0_i32_0 : i32, i32
  }
  func.func @transform_4(%arg0: i32) -> (i32, i32) {
    %c0_i32 = arith.constant 0 : i32
    %c0_i32_0 = arith.constant 0 : i32
    %c0_i32_1 = arith.constant 0 : i32
    return %c0_i32, %c0_i32_0 : i32, i32
  }
  func.func @transform_5(%arg0: i32) -> (i32, i32) {
    %c0_i32 = arith.constant 0 : i32
    %c0_i32_0 = arith.constant 0 : i32
    %c0_i32_1 = arith.constant 0 : i32
    return %c0_i32, %c0_i32_0 : i32, i32
  }
  func.func @transform_6(%arg0: i32) -> (i32, i32) {
    %c0_i32 = arith.constant 0 : i32
    %c0_i32_0 = arith.constant 0 : i32
    %c0_i32_1 = arith.constant 0 : i32
    return %c0_i32, %c0_i32_0 : i32, i32
  }
  func.func @transform_7(%arg0: i32) -> (i32, i32) {
    %c0_i32 = arith.constant 0 : i32
    %c0_i32_0 = arith.constant 0 : i32
    %c0_i32_1 = arith.constant 0 : i32
    return %c0_i32, %c0_i32_0 : i32, i32
  }
  func.func @transform_8(%arg0: i32) -> (i32, i32) {
    %c0_i32 = arith.constant 0 : i32
    %c0_i32_0 = arith.constant 0 : i32
    %c0_i32_1 = arith.constant 0 : i32
    return %c0_i32, %c0_i32_0 : i32, i32
  }
  func.func @transform_9(%arg0: i32) -> (i32, i32) {
    %c0_i32 = arith.constant 0 : i32
    %c0_i32_0 = arith.constant 0 : i32
    %c0_i32_1 = arith.constant 0 : i32
    return %c0_i32, %c0_i32_0 : i32, i32
  }
  func.func @transform_10(%arg0: i32) -> (i32, i32) {
    %c0_i32 = arith.constant 0 : i32
    %c0_i32_0 = arith.constant 0 : i32
    %c0_i32_1 = arith.constant 0 : i32
    return %c0_i32, %c0_i32_0 : i32, i32
  }
  func.func @transform_11(%arg0: i32) -> (i32, i32) {
    %c0_i32 = arith.constant 0 : i32
    %c0_i32_0 = arith.constant 0 : i32
    %c0_i32_1 = arith.constant 0 : i32
    return %c0_i32, %c0_i32_0 : i32, i32
  }
  func.func @transform_12(%arg0: i32) -> (i32, i32) {
    %c0_i32 = arith.constant 0 : i32
    %c0_i32_0 = arith.constant 0 : i32
    %c0_i32_1 = arith.constant 0 : i32
    return %c0_i32, %c0_i32_0 : i32, i32
  }
  func.func @transform_13(%arg0: i32) -> (i32, i32) {
    %c0_i32 = arith.constant 0 : i32
    %c0_i32_0 = arith.constant 0 : i32
    %c0_i32_1 = arith.constant 0 : i32
    return %c0_i32, %c0_i32_0 : i32, i32
  }
  func.func @transform_14(%arg0: i32) -> (i32, i32) {
    %c0_i32 = arith.constant 0 : i32
    %c0_i32_0 = arith.constant 0 : i32
    %c0_i32_1 = arith.constant 0 : i32
    return %c0_i32, %c0_i32_0 : i32, i32
  }
  func.func @transform_15(%arg0: i32) -> (i32, i32) {
    %c0_i32 = arith.constant 0 : i32
    %c0_i32_0 = arith.constant 0 : i32
    %c0_i32_1 = arith.constant 0 : i32
    return %c0_i32, %c0_i32_0 : i32, i32
  }
  func.func @transform_16(%arg0: i32) -> (i32, i32) {
    %c0_i32 = arith.constant 0 : i32
    %c0_i32_0 = arith.constant 0 : i32
    %c0_i32_1 = arith.constant 0 : i32
    return %c0_i32, %c0_i32_0 : i32, i32
  }
  func.func @transform_17(%arg0: i32) -> (i32, i32) {
    %c0_i32 = arith.constant 0 : i32
    %c0_i32_0 = arith.constant 0 : i32
    %c0_i32_1 = arith.constant 0 : i32
    return %c0_i32, %c0_i32_0 : i32, i32
  }
  func.func @transform_18(%arg0: i32) -> (i32, i32) {
    %c0_i32 = arith.constant 0 : i32
    %c0_i32_0 = arith.constant 0 : i32
    %c0_i32_1 = arith.constant 0 : i32
    return %c0_i32, %c0_i32_0 : i32, i32
  }
  func.func @transform_19(%arg0: i32) -> (i32, i32) {
    %c0_i32 = arith.constant 0 : i32
    %c0_i32_0 = arith.constant 0 : i32
    %c0_i32_1 = arith.constant 0 : i32
    return %c0_i32, %c0_i32_0 : i32, i32
  }
}

</mosaic_0001>

<bundles_post_ra>
// kernel: tile.74
= control target key start
LH: loop header
LB: loop body
LE: loop exit
PB: predicated region body
PF: predicated region fallthrough
CT: control target
= control target key end

     0   :  { %s28_s0 = inlined_call_operand.vmem [shape: f32[6], index: 0, kind: input, shape index: {}]   ;;  %s29_s1 = inlined_call_operand.vmem [shape: f32[16,6], index: 1, kind: output, shape index: {}]  }
   0x1   :  { %v4_v0 = vld [vmem:[%s28_s0] ss:$0 sm:$0xff] }
   0x2   :  { %5 = vst [vmem:[%s29_s1] sm:$0xff] %v4_v0  ;;  %8 = vst [vmem:[%s29_s1 + $0x8] sm:$0xff] %v4_v0 }

// kernel: tile.66
= control target key start
LH: loop header
LB: loop body
LE: loop exit
PB: predicated region body
PF: predicated region fallthrough
CT: control target
= control target key end

     0   :  { %s28_s0 = inlined_call_operand.vmem [shape: f32[4], index: 0, kind: input, shape index: {}]   ;;  %s29_s1 = inlined_call_operand.vmem [shape: f32[16,4], index: 1, kind: output, shape index: {}]  }
   0x1   :  { %v4_v0 = vld [vmem:[%s28_s0] ss:$0 sm:$0xff] }
   0x2   :  { %5 = vst [vmem:[%s29_s1] sm:$0xff] %v4_v0  ;;  %8 = vst [vmem:[%s29_s1 + $0x8] sm:$0xff] %v4_v0 }

// kernel: tile.67
= control target key start
LH: loop header
LB: loop body
LE: loop exit
PB: predicated region body
PF: predicated region fallthrough
CT: control target
= control target key end

     0   :  { %s131_s10 = smov 60   ;;  %s132_s11 = smov 52   ;;  %vm3_vm0 = vcmask 31744   ;;  %vm9_vm1 = vcmask 523744   ;;  %vm15_vm2 = vcmask 490944   ;;  %vm21_vm3 = vcmask 458144   ;;  %s207_s0 = inlined_call_operand.vmem [shape: f32[16,4], index: 0, kind: input, shape index: {}]   ;;  %s208_s1 = inlined_call_operand.vmem [shape: f32[1,64], index: 1, kind: output, shape index: {}]  }
   0x1   :  { %v101_v0 = vld [vmem:[%s207_s0 + $0xf] sm:$0x1]   ;;  %v103_v1 = vld [vmem:[%s207_s0 + $0xd] sm:$0x1]   ;;  %v102_v2 = vld [vmem:[%s207_s0 + $0xe] sm:$0x1]  }
   0x2   :  { %7 = vrot.lane.b32.xlu0 %v101_v0, %s131_s10  ;;  %19 = vrot.lane.b32.xlu1 %v103_v1, %s132_s11  ;;  %v104_v3 = vld [vmem:[%s207_s0 + $0xc] sm:$0x1]   ;;  %s133_s16 = smov 56   ;;  %s134_s17 = smov 48   ;;  %v105_v4 = vld [vmem:[%s207_s0 + $0xb] sm:$0x1]  }
   0x3   :  { %v106_v5 = vld [vmem:[%s207_s0 + $0xa] sm:$0x1]   ;;  %v2_v6 = vld [vmem:[%s207_s0] sm:$0x1]   ;;  %s135_s24 = smov 44   ;;  %s136_s25 = smov 40  }
   0x4   :  { %4 = vst.msk [vmem:[#allocation0] sm:$0x1] %vm3_vm0, %v2_v6   ;;  %v107_v7 = vld [vmem:[%s207_s0 + $0x9] sm:$0x1]   ;;  %v108_v8 = vld [vmem:[%s207_s0 + $0x8] sm:$0x1]  }
   0x5   :  { %s137_s30 = smov 36   ;;  %s138_s2 = smov 32   ;;  %v109_v9 = vld [vmem:[%s207_s0 + $0x7] sm:$0x1]   ;;  %v110_v10 = vld [vmem:[%s207_s0 + $0x6] sm:$0x1]  }
   0x6   :  { %13 = vrot.lane.b32.xlu0 %v102_v2, %s133_s16  ;;  %25 = vrot.lane.b32.xlu1 %v104_v3, %s134_s17  ;;  %s139_s7 = smov 28   ;;  %s140_s8 = smov 24   ;;  %v111_v11 = vld [vmem:[%s207_s0 + $0x5] sm:$0x1]   ;;  %v112_v12 = vld [vmem:[%s207_s0 + $0x4] sm:$0x1]  }
   0x7   :  { %s141_s13 = smov 20   ;;  %s142_s14 = smov 16   ;;  %v113_v13 = vld [vmem:[%s207_s0 + $0x3] sm:$0x1]   ;;  %v114_v14 = vld [vmem:[%s207_s0 + $0x2] sm:$0x1]  }
   0x8   :  { %s143_s19 = smov 12   ;;  %s144_s20 = smov 8   ;;  %v115_v15 = vld [vmem:[%s207_s0 + $0x1] sm:$0x1]   ;;  %vm27_vm4 = vcmask 425344   ;;  %vm33_vm5 = vcmask 392544  }
   0x9   :  { %s145_s0 = smov 4   ;;  %vm39_vm6 = vcmask 359744   ;;  %vm45_vm7 = vcmask 326944   ;;  %vm51_vm8 = vcmask 294144   ;;  %vm57_vm9 = vcmask 261344  }
   0xa   :  { %31 = vrot.lane.b32.xlu0 %v105_v4, %s135_s24  ;;  %37 = vrot.lane.b32.xlu1 %v106_v5, %s136_s25  ;;  %vm63_vm10 = vcmask 228544   ;;  %vm69_vm11 = vcmask 195744   ;;  %vm75_vm12 = vcmask 162944   ;;  %vm81_vm13 = vcmask 130144  }
   0xb   :  { %vm87_vm14 = vcmask 97344   ;;  %vm93_vm15 = vcmask 64544  }
   0xe   :  { %43 = vrot.lane.b32.xlu0 %v107_v7, %s137_s30  ;;  %49 = vrot.lane.b32.xlu1 %v108_v8, %s138_s2 }
  0x12   :  { %55 = vrot.lane.b32.xlu0 %v109_v9, %s139_s7  ;;  %61 = vrot.lane.b32.xlu1 %v110_v10, %s140_s8 }
  0x16   :  { %67 = vrot.lane.b32.xlu0 %v111_v11, %s141_s13  ;;  %73 = vrot.lane.b32.xlu1 %v112_v12, %s142_s14 }
  0x1a   :  { %79 = vrot.lane.b32.xlu0 %v113_v13, %s143_s19  ;;  %85 = vrot.lane.b32.xlu1 %v114_v14, %s144_s20 }
  0x1e   :  { %91 = vrot.lane.b32.xlu0 %v115_v15, %s145_s0 }
  0x74   :  { %v8_v16 = vpop.permute.xlu0 %7   ;;  %v20_v17 = vpop.permute.xlu1 %19  }
  0x75   :  { %10 = vst.msk [vmem:[#allocation0] sm:$0x1] %vm9_vm1, %v8_v16  }
  0x78   :  { %v14_v18 = vpop.permute.xlu0 %13   ;;  %v26_v19 = vpop.permute.xlu1 %25  }
  0x79   :  { %16 = vst.msk [vmem:[#allocation0] sm:$0x1] %vm15_vm2, %v14_v18  }
  0x7a   :  { %22 = vst.msk [vmem:[#allocation0] sm:$0x1] %vm21_vm3, %v20_v17  }
  0x7b   :  { %28 = vst.msk [vmem:[#allocation0] sm:$0x1] %vm27_vm4, %v26_v19  }
  0x7c   :  { %v32_v20 = vpop.permute.xlu0 %31   ;;  %v38_v21 = vpop.permute.xlu1 %37  }
  0x7d   :  { %34 = vst.msk [vmem:[#allocation0] sm:$0x1] %vm33_vm5, %v32_v20  }
  0x7e   :  { %40 = vst.msk [vmem:[#allocation0] sm:$0x1] %vm39_vm6, %v38_v21  }
  0x80   :  { %v44_v22 = vpop.permute.xlu0 %43   ;;  %v50_v23 = vpop.permute.xlu1 %49  }
  0x81   :  { %46 = vst.msk [vmem:[#allocation0] sm:$0x1] %vm45_vm7, %v44_v22  }
  0x82   :  { %52 = vst.msk [vmem:[#allocation0] sm:$0x1] %vm51_vm8, %v50_v23  }
  0x84   :  { %v56_v24 = vpop.permute.xlu0 %55   ;;  %v62_v25 = vpop.permute.xlu1 %61  }
  0x85   :  { %58 = vst.msk [vmem:[#allocation0] sm:$0x1] %vm57_vm9, %v56_v24  }
  0x86   :  { %64 = vst.msk [vmem:[#allocation0] sm:$0x1] %vm63_vm10, %v62_v25  }
  0x88   :  { %v68_v26 = vpop.permute.xlu0 %67   ;;  %v74_v27 = vpop.permute.xlu1 %73  }
  0x89   :  { %70 = vst.msk [vmem:[#allocation0] sm:$0x1] %vm69_vm11, %v68_v26  }
  0x8a   :  { %76 = vst.msk [vmem:[#allocation0] sm:$0x1] %vm75_vm12, %v74_v27  }
  0x8c   :  { %v80_v28 = vpop.permute.xlu0 %79   ;;  %v86_v29 = vpop.permute.xlu1 %85  }
  0x8d   :  { %82 = vst.msk [vmem:[#allocation0] sm:$0x1] %vm81_vm13, %v80_v28  }
  0x8e   :  { %88 = vst.msk [vmem:[#allocation0] sm:$0x1] %vm87_vm14, %v86_v29  }
  0x90   :  { %v92_v30 = vpop.permute.xlu0 %91  }
  0x91   :  { %94 = vst.msk [vmem:[#allocation0] sm:$0x1] %vm93_vm15, %v92_v30  }
  0x98   :  { %v98_v31 = vld [vmem:[#allocation0] sm:$0x1] }
  0x99   :  { %100 = vst [vmem:[%s208_s1] sm:$0x1] %v98_v31 }

// kernel: tile.75
= control target key start
LH: loop header
LB: loop body
LE: loop exit
PB: predicated region body
PF: predicated region fallthrough
CT: control target
= control target key end

     0   :  { %s131_s10 = smov 90   ;;  %s132_s11 = smov 78   ;;  %vm3_vm0 = vcmask 48128   ;;  %vm9_vm1 = vcmask 786128   ;;  %vm15_vm2 = vcmask 736928   ;;  %vm21_vm3 = vcmask 687728   ;;  %s207_s0 = inlined_call_operand.vmem [shape: f32[16,6], index: 0, kind: input, shape index: {}]   ;;  %s208_s1 = inlined_call_operand.vmem [shape: f32[1,96], index: 1, kind: output, shape index: {}]  }
   0x1   :  { %v101_v0 = vld [vmem:[%s207_s0 + $0xf] sm:$0x1]   ;;  %v103_v1 = vld [vmem:[%s207_s0 + $0xd] sm:$0x1]   ;;  %v102_v2 = vld [vmem:[%s207_s0 + $0xe] sm:$0x1]  }
   0x2   :  { %7 = vrot.lane.b32.xlu0 %v101_v0, %s131_s10  ;;  %19 = vrot.lane.b32.xlu1 %v103_v1, %s132_s11  ;;  %v104_v3 = vld [vmem:[%s207_s0 + $0xc] sm:$0x1]   ;;  %s133_s16 = smov 84   ;;  %s134_s17 = smov 72   ;;  %v105_v4 = vld [vmem:[%s207_s0 + $0xb] sm:$0x1]  }
   0x3   :  { %v106_v5 = vld [vmem:[%s207_s0 + $0xa] sm:$0x1]   ;;  %v2_v6 = vld [vmem:[%s207_s0] sm:$0x1]   ;;  %s135_s24 = smov 66   ;;  %s136_s25 = smov 60  }
   0x4   :  { %4 = vst.msk [vmem:[#allocation0] sm:$0x1] %vm3_vm0, %v2_v6   ;;  %v107_v7 = vld [vmem:[%s207_s0 + $0x9] sm:$0x1]   ;;  %v108_v8 = vld [vmem:[%s207_s0 + $0x8] sm:$0x1]  }
   0x5   :  { %s137_s30 = smov 54   ;;  %s138_s2 = smov 48   ;;  %v109_v9 = vld [vmem:[%s207_s0 + $0x7] sm:$0x1]   ;;  %v110_v10 = vld [vmem:[%s207_s0 + $0x6] sm:$0x1]  }
   0x6   :  { %13 = vrot.lane.b32.xlu0 %v102_v2, %s133_s16  ;;  %25 = vrot.lane.b32.xlu1 %v104_v3, %s134_s17  ;;  %s139_s7 = smov 42   ;;  %s140_s8 = smov 36   ;;  %v111_v11 = vld [vmem:[%s207_s0 + $0x5] sm:$0x1]   ;;  %v112_v12 = vld [vmem:[%s207_s0 + $0x4] sm:$0x1]  }
   0x7   :  { %s141_s13 = smov 30   ;;  %s142_s14 = smov 24   ;;  %v113_v13 = vld [vmem:[%s207_s0 + $0x3] sm:$0x1]   ;;  %v114_v14 = vld [vmem:[%s207_s0 + $0x2] sm:$0x1]  }
   0x8   :  { %s143_s19 = smov 18   ;;  %s144_s20 = smov 12   ;;  %v115_v15 = vld [vmem:[%s207_s0 + $0x1] sm:$0x1]   ;;  %vm27_vm4 = vcmask 638528   ;;  %vm33_vm5 = vcmask 589328  }
   0x9   :  { %s145_s0 = smov 6   ;;  %vm39_vm6 = vcmask 540128   ;;  %vm45_vm7 = vcmask 490928   ;;  %vm51_vm8 = vcmask 441728   ;;  %vm57_vm9 = vcmask 392528  }
   0xa   :  { %31 = vrot.lane.b32.xlu0 %v105_v4, %s135_s24  ;;  %37 = vrot.lane.b32.xlu1 %v106_v5, %s136_s25  ;;  %vm63_vm10 = vcmask 343328   ;;  %vm69_vm11 = vcmask 294128   ;;  %vm75_vm12 = vcmask 244928   ;;  %vm81_vm13 = vcmask 195728  }
   0xb   :  { %vm87_vm14 = vcmask 146528   ;;  %vm93_vm15 = vcmask 97328  }
   0xe   :  { %43 = vrot.lane.b32.xlu0 %v107_v7, %s137_s30  ;;  %49 = vrot.lane.b32.xlu1 %v108_v8, %s138_s2 }
  0x12   :  { %55 = vrot.lane.b32.xlu0 %v109_v9, %s139_s7  ;;  %61 = vrot.lane.b32.xlu1 %v110_v10, %s140_s8 }
  0x16   :  { %67 = vrot.lane.b32.xlu0 %v111_v11, %s141_s13  ;;  %73 = vrot.lane.b32.xlu1 %v112_v12, %s142_s14 }
  0x1a   :  { %79 = vrot.lane.b32.xlu0 %v113_v13, %s143_s19  ;;  %85 = vrot.lane.b32.xlu1 %v114_v14, %s144_s20 }
  0x1e   :  { %91 = vrot.lane.b32.xlu0 %v115_v15, %s145_s0 }
  0x74   :  { %v8_v16 = vpop.permute.xlu0 %7   ;;  %v20_v17 = vpop.permute.xlu1 %19  }
  0x75   :  { %10 = vst.msk [vmem:[#allocation0] sm:$0x1] %vm9_vm1, %v8_v16  }
  0x78   :  { %v14_v18 = vpop.permute.xlu0 %13   ;;  %v26_v19 = vpop.permute.xlu1 %25  }
  0x79   :  { %16 = vst.msk [vmem:[#allocation0] sm:$0x1] %vm15_vm2, %v14_v18  }
  0x7a   :  { %22 = vst.msk [vmem:[#allocation0] sm:$0x1] %vm21_vm3, %v20_v17  }
  0x7b   :  { %28 = vst.msk [vmem:[#allocation0] sm:$0x1] %vm27_vm4, %v26_v19  }
  0x7c   :  { %v32_v20 = vpop.permute.xlu0 %31   ;;  %v38_v21 = vpop.permute.xlu1 %37  }
  0x7d   :  { %34 = vst.msk [vmem:[#allocation0] sm:$0x1] %vm33_vm5, %v32_v20  }
  0x7e   :  { %40 = vst.msk [vmem:[#allocation0] sm:$0x1] %vm39_vm6, %v38_v21  }
  0x80   :  { %v44_v22 = vpop.permute.xlu0 %43   ;;  %v50_v23 = vpop.permute.xlu1 %49  }
  0x81   :  { %46 = vst.msk [vmem:[#allocation0] sm:$0x1] %vm45_vm7, %v44_v22  }
  0x82   :  { %52 = vst.msk [vmem:[#allocation0] sm:$0x1] %vm51_vm8, %v50_v23  }
  0x84   :  { %v56_v24 = vpop.permute.xlu0 %55   ;;  %v62_v25 = vpop.permute.xlu1 %61  }
  0x85   :  { %58 = vst.msk [vmem:[#allocation0] sm:$0x1] %vm57_vm9, %v56_v24  }
  0x86   :  { %64 = vst.msk [vmem:[#allocation0] sm:$0x1] %vm63_vm10, %v62_v25  }
  0x88   :  { %v68_v26 = vpop.permute.xlu0 %67   ;;  %v74_v27 = vpop.permute.xlu1 %73  }
  0x89   :  { %70 = vst.msk [vmem:[#allocation0] sm:$0x1] %vm69_vm11, %v68_v26  }
  0x8a   :  { %76 = vst.msk [vmem:[#allocation0] sm:$0x1] %vm75_vm12, %v74_v27  }
  0x8c   :  { %v80_v28 = vpop.permute.xlu0 %79   ;;  %v86_v29 = vpop.permute.xlu1 %85  }
  0x8d   :  { %82 = vst.msk [vmem:[#allocation0] sm:$0x1] %vm81_vm13, %v80_v28  }
  0x8e   :  { %88 = vst.msk [vmem:[#allocation0] sm:$0x1] %vm87_vm14, %v86_v29  }
  0x90   :  { %v92_v30 = vpop.permute.xlu0 %91  }
  0x91   :  { %94 = vst.msk [vmem:[#allocation0] sm:$0x1] %vm93_vm15, %v92_v30  }
  0x98   :  { %v98_v31 = vld [vmem:[#allocation0] sm:$0x1] }
  0x99   :  { %100 = vst [vmem:[%s208_s1] sm:$0x1] %v98_v31 }

// kernel: mainbl_forward.1
= control target key start
LH: loop header
LB: loop body
LE: loop exit
PB: predicated region body
PF: predicated region fallthrough
CT: control target
= control target key end

     0   :  { %v2193_v0 = vmov 0.0|0.0   ;;  %vm2194_vm0 = vmmov 0   ;;  %v2195_v4 = vmov 0.0   ;;  %vm95_vm1 = vcmask 523264   ;;  %s3013_s1 = inlined_call_operand.vmem [shape: f32[64,64], index: 1, kind: input, shape index: {}]   ;;  %s3014_s0 = inlined_call_operand.vmem [shape: f32[32,64], index: 0, kind: input, shape index: {}]   ;;  %s3015_s4 = inlined_call_operand.vmem [shape: f32[32,1], index: 4, kind: input, shape index: {}]   ;;  %s3016_s3 = inlined_call_operand.vmem [shape: f32[32,1], index: 3, kind: input, shape index: {}]   ;;  %s3017_s13 = inlined_call_operand.vmem [shape: bf16[192,96], index: 13, kind: input, shape index: {}]   ;;  %s3018_s5 = inlined_call_operand.vmem [shape: f32[1,64], index: 5, kind: input, shape index: {}]   ;;  %s3019_s11 = inlined_call_operand.vmem [shape: f32[1,64], index: 11, kind: input, shape index: {}]   ;;  %s3020_s6 = inlined_call_operand.vmem [shape: f32[1,64], index: 6, kind: input, shape index: {}]   ;;  %s3021_s12 = inlined_call_operand.vmem [shape: f32[1,64], index: 12, kind: input, shape index: {}]   ;;  %s3022_s2 = inlined_call_operand.vmem [shape: f32[96,96], index: 2, kind: input, shape index: {}]   ;;  %s3023_s14 = inlined_call_operand.vmem [shape: f32[1,96], index: 14, kind: input, shape index: {}]   ;;  %s3024_s15 = inlined_call_operand.vmem [shape: bf16[288,96], index: 15, kind: input, shape index: {}]   ;;  %s3025_s7 = inlined_call_operand.vmem [shape: f32[1,96], index: 7, kind: input, shape index: {}]   ;;  %s3026_s8 = inlined_call_operand.vmem [shape: f32[1,96], index: 8, kind: input, shape index: {}]   ;;  %s3027_s16 = inlined_call_operand.vmem [shape: f32[1,96], index: 16, kind: input, shape index: {}]   ;;  %s3028_s17 = inlined_call_operand.vmem [shape: bf16[480,128], index: 17, kind: input, shape index: {}]   ;;  %s3029_s9 = inlined_call_operand.vmem [shape: f32[1,96], index: 9, kind: input, shape index: {}]   ;;  %s3030_s10 = inlined_call_operand.vmem [shape: f32[1,96], index: 10, kind: input, shape index: {}]   ;;  %s3031_s18 = inlined_call_operand.vmem [shape: f32[1,128], index: 18, kind: input, shape index: {}]   ;;  %s3032_s19 = inlined_call_operand.vmem [shape: f32[32,128], index: 19, kind: output, shape index: {}]  }
   0x1   :  { %3037 = sst [smem:[#allocation2_spill]] %s3013_s1  ;;  %1989 = vmatprep.subr.bf16.mxu0 %v2193_v0  ;;  %1924 = vmatprep.mubr.msk.f32.mxu0 %vm2194_vm0, %v2195_v4  ;;  %v2196_v7 = vmov 0   ;;  %vm126_vm2 = vcmask 1040384   ;;  %v2127_v59 = vld [vmem:[%s3017_s13] sm:$0xff]   ;;  %v2128_v60 = vld [vmem:[%s3017_s13 + $0x8] sm:$0xff]   ;;  %v2129_v61 = vld [vmem:[%s3017_s13 + $0x10] sm:$0xff]  }
   0x2   :  { %3038 = sst [smem:[#allocation3_spill]] %s3014_s0  ;;  %s3041_s20 = sld [smem:[#allocation2_spill]]  ;;  %2046 = vset.pattern.permute.xlu1 %v2196_v7  ;;  %2045 = vset.pattern.permute.xlu0 %v2196_v7  ;;  %v2130_v62 = vld [vmem:[%s3017_s13 + $0x18] sm:$0xff]   ;;  %v2131_v63 = vld [vmem:[%s3017_s13 + $0x20] sm:$0xff]   ;;  %vm301_vm3 = vcmask 1046528   ;;  %vm516_vm4 = vcmask 785408  }
   0x3   :  { %3039 = sst [smem:[#allocation4_spill]] %s3015_s4  ;;  %s3042_s28 = sld [smem:[#allocation3_spill]]  ;;  %467 = vmatprep.subr.bf16.mxu1 %v2196_v7  ;;  %vm910_vm5 = vcmask 261120  }
   0x4   :  { %3040 = sst [smem:[#allocation5_spill]] %s3016_s3  ;;  %s3043_s3 = sld [smem:[#allocation4_spill]]  ;;  %468 = vmatpush1.bf16.msra.mxu1 %v2127_v59 }
   0x5   :  { %469 = vmatprep.subr.bf16.mxu1 %v2196_v7 }
   0x8   :  { %v75_v1 = vld [vmem:[%s3041_s20] sm:$0xff]  ;;  %v76_v2 = vld [vmem:[%s3041_s20 + $0x8] sm:$0xff]  ;;  %v77_v3 = vld [vmem:[%s3041_s20 + $0x10] sm:$0xff]  ;;  %470 = vmatpush1.bf16.msra.mxu1 %v2128_v60 }
   0x9   :  { %v1990_v5 = vpack.c.bf16 %v76_v2, %v75_v1  ;;  %v78_v6 = vld [vmem:[%s3041_s20 + $0x18] sm:$0xff]  ;;  %v79_v8 = vld [vmem:[%s3041_s20 + $0x20] sm:$0xff]  ;;  %v2330_v11 = vld [vmem:[%s3042_s28 + $0x8] sm:$0xff]  ;;  %471 = vmatprep.subr.bf16.mxu1 %v2196_v7 }
   0xa   :  { %v2324_v9 = vld [vmem:[%s3042_s28] sm:$0xff]  ;;  %v1993_v10 = vpack.c.bf16 %v78_v6, %v77_v3  ;;  %v2335_v12 = vld [vmem:[%s3042_s28 + $0x10] sm:$0xff]  ;;  %v2340_v13 = vld [vmem:[%s3042_s28 + $0x18] sm:$0xff]  ;;  %v97_v17 = vsel %vm95_vm1, %v2330_v11, 0.0  ;;  %v110_v19 = vmul.f32 %v2330_v11, %v2330_v11  ;;  %s3044_s28 = sld [smem:[#allocation5_spill]] }
   0xb   :  { %1991 = vmatpush3.bf16.msra.mxu0 %v1990_v5  ;;  %v96_v14 = vsel %vm95_vm1, %v2324_v9, 0.0  ;;  %v109_v15 = vmul.f32 %v2324_v9, %v2324_v9  ;;  %v80_v16 = vld [vmem:[%s3041_s20 + $0x28] sm:$0xff]  ;;  %v99_v18 = vsel %vm95_vm1, %v2335_v12, 0.0  ;;  %v71_v20 = vld [vmem:[%s3043_s3] sm:$0xff]  ;;  %v111_v23 = vmul.f32 %v2335_v12, %v2335_v12  ;;  %v81_v34 = vld [vmem:[%s3041_s20 + $0x30] sm:$0xff] }
   0xc   :  { %1992 = vmatprep.subr.bf16.mxu0 %v2193_v0  ;;  %v98_v22 = vadd.f32 %v97_v17, %v96_v14  ;;  %v112_v24 = vmul.f32 %v2340_v13, %v2340_v13  ;;  %316 = vperm.xlu1 %2046, %v71_v20   ;;  %v101_v26 = vsel %vm95_vm1, %v2340_v13, 0.0  ;;  %v114_v27 = vsel %vm95_vm1, %v110_v19, 0.0  ;;  %v72_v28 = vld [vmem:[%s3043_s3 + $0x8] sm:$0xff]  ;;  %v82_v35 = vld [vmem:[%s3041_s20 + $0x38] sm:$0xff]  ;;  %v73_v47 = vld [vmem:[%s3043_s3 + $0x10] sm:$0xff] }
   0xd   :  { %v113_v25 = vsel %vm95_vm1, %v109_v15, 0.0  ;;  %v1996_v30 = vpack.c.bf16 %v80_v16, %v79_v8  ;;  %v116_v33 = vsel %vm95_vm1, %v111_v23, 0.0  ;;  %v1999_v41 = vpack.c.bf16 %v82_v35, %v81_v34  ;;  %v74_v46 = vld [vmem:[%s3043_s3 + $0x18] sm:$0xff]  ;;  %472 = vmatpush1.bf16.msra.mxu1 %v2129_v61  ;;  %v2132_v1 = vld [vmem:[%s3017_s13 + $0x28] sm:$0xff]   ;;  %v2133_v2 = vld [vmem:[%s3017_s13 + $0x30] sm:$0xff]  }
   0xe   :  { %v100_v31 = vadd.f32 %v99_v18, %v98_v22  ;;  %v115_v32 = vadd.f32 %v114_v27, %v113_v25  ;;  %v118_v36 = vsel %vm95_vm1, %v112_v24, 0.0  ;;  %473 = vmatprep.subr.bf16.mxu1 %v2196_v7  ;;  %v2134_v3 = vld [vmem:[%s3017_s13 + $0x38] sm:$0xff]   ;;  %v2135_v5 = vld [vmem:[%s3017_s13 + $0x40] sm:$0xff]   ;;  %v2136_v6 = vld [vmem:[%s3017_s13 + $0x48] sm:$0xff]   ;;  %v2197_v19 = vmov 1966171168  }
   0xf   :  { %1994 = vmatpush3.bf16.msra.mxu0 %v1993_v10  ;;  %v2137_v8 = vld [vmem:[%s3017_s13 + $0x50] sm:$0xff]   ;;  %v221_v20 = vunpack.c.l.s4 %v2197_v19 }
  0x10   :  { %v67_v21 = vld [vmem:[%s3044_s28] sm:$0xff]  ;;  %v68_v29 = vld [vmem:[%s3044_s28 + $0x8] sm:$0xff]  ;;  %1995 = vmatprep.subr.bf16.mxu0 %v2193_v0  ;;  %v102_v37 = vadd.f32 %v101_v26, %v100_v31  ;;  %v117_v38 = vadd.f32 %v116_v33, %v115_v32  ;;  %321 = vperm.xlu1 %2046, %v72_v28   ;;  %v70_v39 = vld [vmem:[%s3044_s28 + $0x18] sm:$0xff] }
  0x11   :  { %279 = vperm.xlu0 %2045, %v67_v21   ;;  %v69_v40 = vld [vmem:[%s3044_s28 + $0x10] sm:$0xff]  ;;  %474 = vmatpush1.bf16.msra.mxu1 %v2130_v62  ;;  %v209_v21 = vlaneseq  ;;  %v222_v22 = vunpack.c.0.s8 %v221_v20  ;;  %v1179_v31 = vld [vmem:[%s3019_s11] sm:$0x1] }
  0x12   :  { %v103_v42 = vrot.slane %v102_v37, 4  ;;  %v119_v43 = vadd.f32 %v118_v36, %v117_v38  ;;  %475 = vmatprep.subr.bf16.mxu1 %v2196_v7 }
  0x13   :  { %1997 = vmatpush3.bf16.msra.mxu0 %v1996_v30  ;;  %v210_v23 = vshrl.u32 %v209_v21, 7 }
  0x14   :  { %1998 = vmatprep.subr.bf16.mxu0 %v2193_v0  ;;  %v104_v44 = vadd.f32 %v103_v42, %v102_v37  ;;  %v120_v45 = vrot.slane %v119_v43, 4  ;;  %294 = vperm.xlu1 %2046, %v70_v39  }
  0x15   :  { %284 = vperm.xlu0 %2045, %v68_v29   ;;  %476 = vmatpush1.bf16.msra.mxu1 %v2131_v63  ;;  %v2447_v24 = vsub.s32 %v222_v22, %v210_v23  ;;  %v2449_v26 = vsub.s32 0, %v210_v23  ;;  %v207_v29 = vld [vmem:[%s3018_s5] sm:$0x1] }
  0x16   :  { %v105_v48 = vrot.slane %v104_v44, 2  ;;  %v121_v49 = vadd.f32 %v120_v45, %v119_v43  ;;  %477 = vmatprep.subr.bf16.mxu1 %v2196_v7  ;;  %v1738_v43 = vld [vmem:[%s3020_s6] ss:$0 sm:$0xff] }
  0x17   :  { %2000 = vmatpush3.bf16.msra.mxu0 %v1999_v41 }
  0x18   :  { %2001 = vmatprep.subr.bf16.mxu0 %v2193_v0  ;;  %v106_v50 = vadd.f32 %v105_v48, %v104_v44  ;;  %v122_v51 = vrot.slane %v121_v49, 2  ;;  %331 = vperm.xlu1 %2046, %v74_v46  }
  0x19   :  { %289 = vperm.xlu0 %2045, %v69_v40   ;;  %478 = vmatpush1.bf16.msra.mxu1 %v2132_v1 }
  0x1a   :  { %v107_v52 = vrot.slane %v106_v50, 1  ;;  %v123_v53 = vadd.f32 %v122_v51, %v121_v49  ;;  %479 = vmatprep.subr.bf16.mxu1 %v2196_v7 }
  0x1c   :  { %v108_v54 = vadd.f32 %v107_v52, %v106_v50  ;;  %v124_v55 = vrot.slane %v123_v53, 1 }
  0x1d   :  { %326 = vperm.xlu0 %2045, %v73_v47   ;;  %480 = vmatpush1.bf16.msra.mxu1 %v2133_v2 }
  0x1e   :  { %v125_v56 = vadd.f32 %v124_v55, %v123_v53  ;;  %481 = vmatprep.subr.bf16.mxu1 %v2196_v7 }
  0x20   :  { %v127_v57 = vsel %vm126_vm2, %v108_v54, %v125_v56 }
  0x21   :  { %v128_v58 = vmul.f32 0.03125, %v127_v57  ;;  %482 = vmatpush1.bf16.msra.mxu1 %v2134_v3 }
  0x22   :  { %483 = vmatprep.subr.bf16.mxu1 %v2196_v7 }
  0x23   :  { %1925 = vmatmul.mubr.msk.f32.vlgmr.msra.gmra.mrb[0].mxu0 %vm95_vm1, %v128_v58 }
  0x24   :  { %1951 = vmatprep.mubr.msk.f32.mxu0 %vm2194_vm0, %v2195_v4 }
  0x25   :  { %484 = vmatpush1.bf16.msra.mxu1 %v2135_v5  ;;  %v2138_v5 = vld [vmem:[%s3017_s13 + $0x58] sm:$0xff]   ;;  %s2198_s13 = smov 64  }
  0x26   :  { %485 = vmatprep.subr.bf16.mxu1 %v2196_v7 }
  0x29   :  { %486 = vmatpush1.bf16.msra.mxu1 %v2136_v6 }
  0x2a   :  { %487 = vmatprep.subr.bf16.mxu1 %v2196_v7 }
  0x2d   :  { %488 = vmatpush1.bf16.msra.mxu1 %v2137_v8 }
  0x2e   :  { %489 = vmatprep.subr.bf16.mxu1 %v2196_v7 }
  0x31   :  { %490 = vmatpush1.bf16.msra.mxu1 %v2138_v5 }
  0x32   :  { %2019 = vmatprep.subr.bf16.mxu1 %v2193_v0 }
  0x8b   :  { %v2460_v33 = vpop.permute.xlu1 %316 }
  0x90   :  { %v2462_v34 = vpop.permute.xlu0 %279 }
  0x94   :  { %v2478_v50 = vpop.permute.xlu0 %284 }
  0x98   :  { %v2497_v20 = vpop.permute.xlu0 %289 }
  0xf6   :  { %v198_v10 = vpop.f32.mrb[0].mxu0 }
  0xf7   :  { %v202_v14 = vmul.f32 %v198_v10, %v198_v10  ;;  %v1926_v15 = vpop.f32.mrb[1].mxu0  ;;  %v212_v30 = vrot.slane %v198_v10, %v2449_v26 }
  0xf9   :  { %v204_v16 = vrot.slane %v202_v14, 7  ;;  %v213_v37 = vsub.f32 %v2324_v9, %v212_v30  ;;  %v214_v38 = vsub.f32 %v2330_v11, %v212_v30  ;;  %v215_v39 = vsub.f32 %v2335_v12, %v212_v30  ;;  %v1779_v9 = vld [vmem:[%s3021_s12] ss:$0 sm:$0xff]  ;;  %v2476_v11 = vpop.permute.xlu1 %321 }
  0xfa   :  { %v216_v40 = vsub.f32 %v2340_v13, %v212_v30 }
  0xfb   :  { %v206_v17 = vsub.f32 %v198_v10, %v204_v16 }
  0xfd   :  { %v217_v18 = vadd.f32 1e-05, %v206_v17  ;;  %v2491_v10 = vpop.permute.xlu1 %294 }
  0xff   :  { %2187 = vrsqrt.f32 %v217_v18 }
 0x109   :  { %v2188_v25 = vpop.eup %2187 }
 0x10a   :  { %v226_v27 = vrot.slane %v2188_v25, %v2447_v24 }
 0x10c   :  { %v227_v28 = vcombine.high %v226_v27, %v226_v27 }
 0x10e   :  { %v234_v32 = vrot.slane %v227_v28, %v2447_v24 }
 0x110   :  { %v236_v35 = vmul.f32 %v234_v32, %v207_v29  ;;  %v1181_v36 = vmul.f32 %v1179_v31, %v234_v32  ;;  %v2517_v32 = vpop.permute.xlu1 %331 }
 0x112   :  { %v241_v41 = vrot.slane %v236_v35, %v2449_v26  ;;  %v1186_v42 = vrot.slane %v1181_v36, %v2449_v26 }
 0x114   :  { %v243_v44 = vmul.f32 %v241_v41, %v213_v37  ;;  %v244_v45 = vmul.f32 %v241_v41, %v214_v38  ;;  %v245_v46 = vmul.f32 %v241_v41, %v215_v39  ;;  %v246_v47 = vmul.f32 %v241_v41, %v216_v40 }
 0x115   :  { %v1188_v12 = vmul.f32 %v1186_v42, %v213_v37  ;;  %v1189_v13 = vmul.f32 %v1186_v42, %v214_v38  ;;  %v1190_v48 = vmul.f32 %v1186_v42, %v215_v39  ;;  %v1191_v49 = vmul.f32 %v1186_v42, %v216_v40  ;;  %v2526_v39 = vpop.permute.xlu0 %326 }
 0x116   :  { %v254_v51 = vadd.f32 %v1738_v43, %v244_v45  ;;  %v255_v52 = vadd.f32 %v1738_v43, %v245_v46  ;;  %v256_v53 = vadd.f32 %v1738_v43, %v246_v47  ;;  %v253_v54 = vadd.f32 %v1738_v43, %v243_v44 }
 0x117   :  { %v1198_v55 = vadd.f32 %v1779_v9, %v1188_v12  ;;  %v1199_v56 = vadd.f32 %v1779_v9, %v1189_v13  ;;  %v1200_v57 = vadd.f32 %v1779_v9, %v1190_v48  ;;  %v1201_v58 = vadd.f32 %v1779_v9, %v1191_v49 }
 0x118   :  { %v257_v59 = vmax.f32 %v253_v54, 0.0  ;;  %v258_v60 = vmax.f32 %v254_v51, 0.0  ;;  %v259_v61 = vmax.f32 %v255_v52, 0.0  ;;  %v260_v62 = vmax.f32 %v256_v53, 0.0 }
 0x119   :  { %v2480_v63 = vmax.f32 %v1198_v55, 0.0  ;;  %v2482_v1 = vmax.f32 %v1199_v56, 0.0  ;;  %v2484_v2 = vmax.f32 %v1200_v57, 0.0  ;;  %v2486_v3 = vmax.f32 %v1201_v58, 0.0 }
 0x11a   :  { %v265_v6 = vrot.slane %v257_v59, 7  ;;  %v266_v8 = vrot.slane %v258_v60, 7  ;;  %v268_v14 = vrot.slane %v259_v61, 7  ;;  %v270_v15 = vrot.slane %v260_v62, 7 }
 0x11b   :  { %v1298_v16 = vrot.slane %v2480_v63, 1  ;;  %v1299_v17 = vrot.slane %v2482_v1, 1  ;;  %v1282_v18 = vrot.slane %v2480_v63, 7  ;;  %v1301_v19 = vrot.slane %v2484_v2, 1 }
 0x11c   :  { %v267_v21 = vsel %vm126_vm2, %v265_v6, %v266_v8  ;;  %v1283_v22 = vrot.slane %v2482_v1, 7  ;;  %v271_v23 = vsel %vm126_vm2, %v268_v14, %v270_v15  ;;  %v1285_v29 = vrot.slane %v2484_v2, 7 }
 0x11d   :  { %v2504_v25 = vsel %vm301_vm3, %v1298_v16, %v1299_v17  ;;  %v2507_v27 = vsel %vm301_vm3, %v1299_v17, %v1301_v19  ;;  %v1287_v30 = vrot.slane %v2486_v3, 7  ;;  %v269_v31 = vsel %vm126_vm2, %v266_v8, %v268_v14 }
 0x11e   :  { %v2512_v28 = vsel %vm126_vm2, %v1282_v18, %v1283_v22  ;;  %v307_v35 = vrot.slane %v260_v62, 1  ;;  %v1303_v36 = vrot.slane %v2486_v3, 1  ;;  %v2524_v38 = vsel %vm126_vm2, %v1283_v22, %v1285_v29 }
 0x11f   :  { %v2521_v37 = vsel %vm126_vm2, %v1285_v29, %v1287_v30  ;;  %v305_v40 = vrot.slane %v259_v61, 1  ;;  %v2052_v46 = vpack.i.bf16 %v260_v62, %v259_v61  ;;  %v2047_v47 = vpack.i.bf16 %v258_v60, %v257_v59  ;;  %v84_v29 = vld [vmem:[%s3022_s2 + $0x8] sm:$0xff] }
 0x120   :  { %v313_v41 = vsel %vm301_vm3, %v307_v35, 0.0  ;;  %v2534_v44 = vsel %vm301_vm3, %v1301_v19, %v1303_v36  ;;  %v302_v9 = vrot.slane %v257_v59, 1  ;;  %v303_v12 = vrot.slane %v258_v60, 1 }
 0x121   :  { %v337_v42 = vmul.f32 %v2517_v32, %v313_v41  ;;  %v308_v43 = vsel %vm301_vm3, %v305_v40, %v307_v35  ;;  %v2077_v13 = vpack.i.bf16 %v2482_v1, %v2480_v63  ;;  %v2082_v48 = vpack.i.bf16 %v2486_v3, %v2484_v2  ;;  %2053 = vrot.lane.b32.xlu1 %v2052_v46, %s2198_s13  ;;  %v88_v41 = vld [vmem:[%s3022_s2 + $0x28] sm:$0xff] }
 0x122   :  { %v336_v45 = vmul.f32 %v2526_v39, %v308_v43  ;;  %2048 = vrot.lane.b32.xlu0 %v2047_v47, %s2198_s13  ;;  %v304_v51 = vsel %vm301_vm3, %v302_v9, %v303_v12  ;;  %v306_v52 = vsel %vm301_vm3, %v303_v12, %v305_v40  ;;  %v276_v56 = vsel %vm126_vm2, 0.0, %v265_v6  ;;  %v87_v40 = vld [vmem:[%s3022_s2 + $0x20] sm:$0xff]  ;;  %v89_v43 = vld [vmem:[%s3022_s2 + $0x30] sm:$0xff]  ;;  %v92_v9 = vld [vmem:[%s3022_s2 + $0x48] sm:$0xff] }
 0x123   :  { %v334_v53 = vmul.f32 %v2460_v33, %v304_v51  ;;  %v335_v54 = vmul.f32 %v2476_v11, %v306_v52  ;;  %v297_v57 = vmul.f32 %v2462_v34, %v276_v56  ;;  %v298_v58 = vmul.f32 %v2478_v50, %v267_v21  ;;  %v91_v47 = vld [vmem:[%s3022_s2 + $0x40] sm:$0xff]  ;;  %v94_v51 = vld [vmem:[%s3022_s2 + $0x58] sm:$0xff] }
 0x124   :  { %v358_v49 = vpack.c.bf16 %v337_v42, %v336_v45  ;;  %v300_v59 = vmul.f32 %v2491_v10, %v271_v23  ;;  %v299_v60 = vmul.f32 %v2497_v20, %v269_v31  ;;  %v83_v23 = vld [vmem:[%s3022_s2] sm:$0xff]  ;;  %v85_v31 = vld [vmem:[%s3022_s2 + $0x10] sm:$0xff]  ;;  %v2008_v42 = vpack.c.bf16 %v88_v41, %v87_v40  ;;  %v90_v45 = vld [vmem:[%s3022_s2 + $0x38] sm:$0xff] }
 0x125   :  { %v356_v55 = vpack.c.bf16 %v335_v54, %v334_v53  ;;  %v2002_v30 = vpack.c.bf16 %v84_v29, %v83_v23  ;;  %v2011_v46 = vpack.c.bf16 %v90_v45, %v89_v43  ;;  %v2014_v12 = vpack.c.bf16 %v92_v9, %v91_v47  ;;  %v1739_v53 = vld [vmem:[%s3023_s14] ss:$0 sm:$0xff] }
 0x126   :  { %v2748_v63 = vmul.f32 %v2504_v25, %v2460_v33  ;;  %v2156_v25 = vld [vmem:[%s3024_s15 + $0x88] sm:$0xff]  }
 0x127   :  { %1752 = vmatprep.mubr.msk.bf16.mxu1 %vm95_vm1, %v356_v55  ;;  %2003 = vmatpush3.bf16.msra.mxu0 %v2002_v30 }
 0x128   :  { %2004 = vmatprep.subr.bf16.mxu0 %v2193_v0 }
 0x193   :  { %v2054_v61 = vpop.permute.xlu1 %2053 }
 0x194   :  { %v2049_v62 = vpop.permute.xlu0 %2048  ;;  %v2056_v5 = vunpack.i.h.bf16 %v2054_v61  ;;  %v2055_v8 = vunpack.i.l.bf16 %v2054_v61 }
 0x195   :  { %v2051_v14 = vunpack.i.h.bf16 %v2049_v62  ;;  %v2050_v15 = vunpack.i.l.bf16 %v2049_v62 }
 0x196   :  { %v352_v6 = vsel %vm95_vm1, %v299_v60, %v2055_v8  ;;  %v353_v19 = vsel %vm95_vm1, %v300_v59, %v2056_v5 }
 0x197   :  { %v350_v16 = vsel %vm95_vm1, %v297_v57, %v2050_v15  ;;  %v351_v17 = vsel %vm95_vm1, %v298_v58, %v2051_v14  ;;  %v357_v21 = vpack.c.bf16 %v353_v19, %v352_v6 }
 0x198   :  { %v355_v22 = vpack.c.bf16 %v351_v17, %v350_v16 }
 0x19a   :  { %500 = vmatmul.mubr.bf16.vlgmr.msra.gmra.mrb[0].mxu1 %v355_v22 }
 0x19b   :  { %1753 = vmatprep.mubr.msk.bf16.mxu1 %vm95_vm1, %v358_v49  ;;  %2021 = vmatpush3.bf16.msra.mxu1 %v2002_v30  ;;  %v93_v49 = vld [vmem:[%s3022_s2 + $0x50] sm:$0xff] }
 0x19c   :  { %2022 = vmatprep.subr.bf16.mxu1 %v2193_v0  ;;  %v2017_v52 = vpack.c.bf16 %v94_v51, %v93_v49 }
 0x1a2   :  { %508 = vmatmul.mubr.bf16.gmra.mrb[4].mxu1 %v357_v21 }
 0x1a3   :  { %1986 = vmatprep.mubr.msk.f32.mxu1 %vm2194_vm0, %v2195_v4  ;;  %v86_v4 = vld [vmem:[%s3022_s2 + $0x18] sm:$0xff] }
 0x1a4   :  { %v2005_v35 = vpack.c.bf16 %v86_v4, %v85_v31 }
 0x1a6   :  { %2006 = vmatpush3.bf16.msra.mxu0 %v2005_v35  ;;  %2024 = vmatpush3.bf16.msra.mxu1 %v2005_v35 }
 0x1a7   :  { %2007 = vmatprep.subr.bf16.mxu0 %v2193_v0  ;;  %2025 = vmatprep.subr.bf16.mxu1 %v2193_v0 }
 0x1aa   :  { %2009 = vmatpush3.bf16.msra.mxu0 %v2008_v42  ;;  %2027 = vmatpush3.bf16.msra.mxu1 %v2008_v42 }
 0x1ab   :  { %2010 = vmatprep.subr.bf16.mxu0 %v2193_v0  ;;  %2028 = vmatprep.subr.bf16.mxu1 %v2193_v0 }
 0x1ae   :  { %2012 = vmatpush3.bf16.msra.mxu0 %v2011_v46  ;;  %2030 = vmatpush3.bf16.msra.mxu1 %v2011_v46 }
 0x1af   :  { %2013 = vmatprep.subr.bf16.mxu0 %v2193_v0  ;;  %2031 = vmatprep.subr.bf16.mxu1 %v2193_v0 }
 0x1b2   :  { %2015 = vmatpush3.bf16.msra.mxu0 %v2014_v12  ;;  %2033 = vmatpush3.bf16.msra.mxu1 %v2014_v12 }
 0x1b3   :  { %2016 = vmatprep.subr.bf16.mxu0 %v2193_v0  ;;  %2034 = vmatprep.subr.bf16.mxu1 %v2193_v0 }
 0x1b6   :  { %2018 = vmatpush3.bf16.msra.mxu0 %v2017_v52  ;;  %2036 = vmatpush3.bf16.msra.mxu1 %v2017_v52 }
 0x1b7   :  { %1680 = vmatprep.subr.bf16.mxu1 %v2196_v7 }
 0x26d   :  { %v501_v54 = vpop.f32.mrb[0].mxu1 }
 0x26e   :  { %v503_v55 = vpop.f32.mrb[1].mxu1  ;;  %v2610_v57 = vadd.f32 %v1739_v53, %v501_v54 }
 0x26f   :  { %v504_v56 = vpop.f32.mrb[2].mxu1 }
 0x270   :  { %v2612_v58 = vadd.f32 %v1739_v53, %v504_v56  ;;  %v506_v59 = vpop.f32.mrb[3].mxu1  ;;  %v530_v60 = vmul.f32 %v2610_v57, %v2610_v57  ;;  %v517_v5 = vsel %vm516_vm4, %v2610_v57, 0.0 }
 0x272   :  { %v531_v0 = vmul.f32 %v2612_v58, %v2612_v58  ;;  %v518_v61 = vsel %vm516_vm4, %v2612_v58, 0.0  ;;  %v534_v6 = vsel %vm516_vm4, %v530_v60, 0.0  ;;  %v2139_v60 = vld [vmem:[%s3024_s15 + $0x40] sm:$0xff]  }
 0x273   :  { %v519_v16 = vadd.f32 %v518_v61, %v517_v5  ;;  %v2140_v61 = vld [vmem:[%s3024_s15] sm:$0xff]   ;;  %1835 = vmatprep.subr.bf16.mxu0 %v2139_v60  ;;  %v2142_v5 = vld [vmem:[%s3024_s15 + $0x8] sm:$0xff]  }
 0x274   :  { %v535_v8 = vsel %vm516_vm4, %v531_v0, 0.0 }
 0x275   :  { %v509_v62 = vpop.f32.mrb[4].mxu1  ;;  %v536_v29 = vadd.f32 %v535_v8, %v534_v6  ;;  %v2143_v8 = vld [vmem:[%s3024_s15 + $0x50] sm:$0xff]   ;;  %v2147_v6 = vld [vmem:[%s3024_s15 + $0x60] sm:$0xff]  }
 0x276   :  { %v2623_v14 = vadd.f32 %v1739_v53, %v509_v62  ;;  %v511_v15 = vpop.f32.mrb[5].mxu1  ;;  %v2141_v62 = vld [vmem:[%s3024_s15 + $0x48] sm:$0xff]  }
 0x277   :  { %v512_v17 = vpop.f32.mrb[6].mxu1  ;;  %v2144_v15 = vld [vmem:[%s3024_s15 + $0x10] sm:$0xff]  }
 0x278   :  { %v520_v19 = vsel %vm516_vm4, %v2623_v14, 0.0  ;;  %v532_v22 = vmul.f32 %v2623_v14, %v2623_v14  ;;  %v2630_v21 = vadd.f32 %v1739_v53, %v512_v17  ;;  %v514_v23 = vpop.f32.mrb[7].mxu1  ;;  %v2146_v17 = vld [vmem:[%s3024_s15 + $0x18] sm:$0xff]  }
 0x279   :  { %v521_v30 = vadd.f32 %v520_v19, %v519_v16  ;;  %v2145_v16 = vld [vmem:[%s3024_s15 + $0x58] sm:$0xff]   ;;  %v2148_v19 = vld [vmem:[%s3024_s15 + $0x20] sm:$0xff]   ;;  %v2150_v23 = vld [vmem:[%s3024_s15 + $0x28] sm:$0xff]  }
 0x27a   :  { %v537_v31 = vsel %vm516_vm4, %v532_v22, 0.0  ;;  %v522_v4 = vsel %vm516_vm4, %v2630_v21, 0.0  ;;  %v533_v35 = vmul.f32 %v2630_v21, %v2630_v21  ;;  %v2149_v22 = vld [vmem:[%s3024_s15 + $0x68] sm:$0xff]  }
 0x27b   :  { %v538_v40 = vadd.f32 %v537_v31, %v536_v29  ;;  %v523_v41 = vadd.f32 %v522_v4, %v521_v30 }
 0x27c   :  { %v539_v42 = vsel %vm516_vm4, %v533_v35, 0.0 }
 0x27d   :  { %v524_v43 = vrot.slane %v523_v41, 4  ;;  %v540_v45 = vadd.f32 %v539_v42, %v538_v40 }
 0x27f   :  { %v525_v46 = vadd.f32 %v524_v43, %v523_v41  ;;  %v541_v47 = vrot.slane %v540_v45, 4 }
 0x281   :  { %v526_v9 = vrot.slane %v525_v46, 2  ;;  %v542_v12 = vadd.f32 %v541_v47, %v540_v45  ;;  %v627_v45 = vld [vmem:[%s3025_s7] sm:$0x1] }
 0x283   :  { %v527_v49 = vadd.f32 %v526_v9, %v525_v46  ;;  %v543_v51 = vrot.slane %v542_v12, 2 }
 0x285   :  { %v528_v52 = vrot.slane %v527_v49, 1  ;;  %v544_v53 = vadd.f32 %v543_v51, %v542_v12 }
 0x287   :  { %v545_v54 = vrot.slane %v544_v53, 1  ;;  %v529_v55 = vadd.f32 %v528_v52, %v527_v49 }
 0x289   :  { %v546_v56 = vadd.f32 %v545_v54, %v544_v53  ;;  %v2151_v54 = vld [vmem:[%s3024_s15 + $0x70] sm:$0xff]  }
 0x28b   :  { %v547_v59 = vsel %vm126_vm2, %v529_v55, %v546_v56  ;;  %v2152_v55 = vld [vmem:[%s3024_s15 + $0x30] sm:$0xff]  }
 0x28c   :  { %v548_v0 = vmul.f32 0.03125, %v547_v59 }
 0x28e   :  { %1952 = vmatmul.mubr.msk.f32.vlgmr.msra.gmra.mrb[2].mxu0 %vm516_vm4, %v548_v0 }
 0x28f   :  { %1836 = vmatpush3.bf16.msra.mxu0 %v2140_v61 }
 0x290   :  { %1837 = vmatprep.subr.bf16.mxu0 %v2141_v62  ;;  %v2153_v62 = vld [vmem:[%s3024_s15 + $0x78] sm:$0xff]  }
 0x293   :  { %1838 = vmatpush3.bf16.msra.mxu0 %v2142_v5  ;;  %v2154_v5 = vld [vmem:[%s3024_s15 + $0x38] sm:$0xff]  }
 0x294   :  { %1839 = vmatprep.subr.bf16.mxu0 %v2143_v8 }
 0x297   :  { %1840 = vmatpush3.bf16.msra.mxu0 %v2144_v15 }
 0x298   :  { %1841 = vmatprep.subr.bf16.mxu0 %v2145_v16 }
 0x29b   :  { %1842 = vmatpush3.bf16.msra.mxu0 %v2146_v17 }
 0x29c   :  { %1843 = vmatprep.subr.bf16.mxu0 %v2147_v6 }
 0x29f   :  { %1844 = vmatpush3.bf16.msra.mxu0 %v2148_v19 }
 0x2a0   :  { %1845 = vmatprep.subr.bf16.mxu0 %v2149_v22 }
 0x2a3   :  { %1846 = vmatpush3.bf16.msra.mxu0 %v2150_v23 }
 0x2a4   :  { %1847 = vmatprep.subr.bf16.mxu0 %v2151_v54 }
 0x2a7   :  { %1848 = vmatpush3.bf16.msra.mxu0 %v2152_v55 }
 0x2a8   :  { %1849 = vmatprep.subr.bf16.mxu0 %v2153_v62 }
 0x2ab   :  { %1850 = vmatpush3.bf16.msra.mxu0 %v2154_v5  ;;  %v1293_v5 = vsel %vm126_vm2, 0.0, %v1282_v18  ;;  %v2752_v18 = vmul.f32 %v2507_v27, %v2476_v11 }
 0x361   :  { %v618_v29 = vpop.f32.mrb[2].mxu0 }
 0x362   :  { %v622_v30 = vmul.f32 %v618_v29, %v618_v29  ;;  %v1953_v31 = vpop.f32.mrb[3].mxu0  ;;  %v632_v46 = vrot.slane %v618_v29, %v2449_v26 }
 0x364   :  { %v624_v4 = vrot.slane %v622_v30, 7  ;;  %v633_v12 = vsub.f32 %v2610_v57, %v632_v46  ;;  %v634_v49 = vsub.f32 %v2612_v58, %v632_v46  ;;  %v635_v51 = vsub.f32 %v2623_v14, %v632_v46  ;;  %v1755_v57 = vld [vmem:[%s3026_s8] ss:$0 sm:$0xff]  ;;  %s2199_s8 = smov 96  }
 0x365   :  { %v636_v52 = vsub.f32 %v2630_v21, %v632_v46 }
 0x366   :  { %v626_v35 = vsub.f32 %v618_v29, %v624_v4 }
 0x368   :  { %v637_v40 = vadd.f32 1e-05, %v626_v35 }
 0x36a   :  { %2189 = vrsqrt.f32 %v637_v40 }
 0x374   :  { %v2190_v41 = vpop.eup %2189 }
 0x375   :  { %v646_v42 = vrot.slane %v2190_v41, %v2447_v24  ;;  %v2707_v41 = vld [vmem:[%s3024_s15 + $0x80] sm:$0xff]  }
 0x376   :  { %1954 = vmatprep.subr.bf16.mxu0 %v2707_v41 }
 0x377   :  { %v647_v43 = vcombine.high %v646_v42, %v646_v42 }
 0x379   :  { %v654_v47 = vrot.slane %v647_v43, %v2447_v24 }
 0x37b   :  { %v656_v9 = vmul.f32 %v654_v47, %v627_v45 }
 0x37d   :  { %v661_v53 = vrot.slane %v656_v9, %v2449_v26 }
 0x37f   :  { %v663_v56 = vmul.f32 %v661_v53, %v633_v12  ;;  %v664_v58 = vmul.f32 %v661_v53, %v634_v49  ;;  %v665_v59 = vmul.f32 %v661_v53, %v635_v51  ;;  %v666_v14 = vmul.f32 %v661_v53, %v636_v52 }
 0x381   :  { %v673_v21 = vadd.f32 %v1755_v57, %v663_v56  ;;  %v674_v0 = vadd.f32 %v1755_v57, %v664_v58  ;;  %v675_v60 = vadd.f32 %v1755_v57, %v665_v59  ;;  %v676_v61 = vadd.f32 %v1755_v57, %v666_v14 }
 0x383   :  { %v677_v8 = vmax.f32 %v673_v21, 0.0  ;;  %v678_v15 = vmax.f32 %v674_v0, 0.0  ;;  %v679_v16 = vmax.f32 %v675_v60, 0.0  ;;  %v680_v17 = vmax.f32 %v676_v61, 0.0 }
 0x385   :  { %v686_v6 = vrot.slane %v678_v15, 7  ;;  %v2057_v19 = vpack.i.bf16 %v678_v15, %v677_v8  ;;  %v685_v22 = vrot.slane %v677_v8, 7  ;;  %v690_v23 = vrot.slane %v680_v17, 7 }
 0x386   :  { %v688_v29 = vrot.slane %v679_v16, 7  ;;  %v701_v30 = vrot.slane %v677_v8, 1  ;;  %v702_v31 = vrot.slane %v678_v15, 1  ;;  %v704_v4 = vrot.slane %v679_v16, 1 }
 0x387   :  { %2058 = vrot.lane.b32.xlu0 %v2057_v19, %s2199_s8  ;;  %v706_v35 = vrot.slane %v680_v17, 1  ;;  %v687_v40 = vsel %vm126_vm2, %v685_v22, %v686_v6  ;;  %v2067_v42 = vpack.i.bf16 %v680_v17, %v679_v16  ;;  %v696_v57 = vsel %vm126_vm2, 0.0, %v685_v22 }
 0x388   :  { %v703_v43 = vsel %vm301_vm3, %v701_v30, %v702_v31  ;;  %v689_v45 = vsel %vm126_vm2, %v686_v6, %v688_v29  ;;  %v705_v46 = vsel %vm301_vm3, %v702_v31, %v704_v4  ;;  %v691_v51 = vsel %vm126_vm2, %v688_v29, %v690_v23 }
 0x389   :  { %v713_v47 = vmul.f32 %v703_v43, %v2460_v33  ;;  %v707_v9 = vsel %vm301_vm3, %v704_v4, %v706_v35  ;;  %v712_v12 = vsel %vm301_vm3, %v706_v35, 0.0  ;;  %v714_v49 = vmul.f32 %v705_v46, %v2476_v11 }
 0x38a   :  { %v715_v53 = vmul.f32 %v707_v9, %v2526_v39  ;;  %v716_v54 = vmul.f32 %v712_v12, %v2517_v32  ;;  %v697_v14 = vmul.f32 %v696_v57, %v2462_v34  ;;  %v698_v21 = vmul.f32 %v687_v40, %v2478_v50 }
 0x38b   :  { %2068 = vrot.lane.b32.xlu0 %v2067_v42, %s2199_s8  ;;  %v2062_v52 = vpack.i.bf16 %v714_v49, %v713_v47  ;;  %v699_v2 = vmul.f32 %v689_v45, %v2497_v20  ;;  %v1294_v23 = vmul.f32 %v1293_v5, %v2462_v34  ;;  %v1295_v29 = vmul.f32 %v2512_v28, %v2478_v50 }
 0x38c   :  { %v2072_v55 = vpack.i.bf16 %v716_v54, %v715_v53  ;;  %v1309_v9 = vsel %vm301_vm3, %v1303_v36, 0.0  ;;  %v1297_v53 = vmul.f32 %v2521_v37, %v2491_v10  ;;  %v1296_v54 = vmul.f32 %v2524_v38, %v2497_v20 }
 0x38d   :  { %2063 = vrot.lane.b32.xlu1 %v2062_v52, %s2198_s13  ;;  %v2780_v3 = vmul.f32 %v1309_v9, %v2517_v32  ;;  %v2784_v36 = vmul.f32 %v2534_v44, %v2526_v39 }
 0x38f   :  { %2078 = vrot.lane.b32.xlu0 %v2077_v13, %s2198_s13 }
 0x391   :  { %2073 = vrot.lane.b32.xlu1 %v2072_v55, %s2198_s13 }
 0x395   :  { %2083 = vrot.lane.b32.xlu1 %v2082_v48, %s2198_s13  ;;  %v700_v48 = vmul.f32 %v691_v51, %v2491_v10 }
 0x3f9   :  { %v2059_v56 = vpop.permute.xlu0 %2058 }
 0x3fa   :  { %v2061_v58 = vunpack.i.h.bf16 %v2059_v56  ;;  %v2060_v59 = vunpack.i.l.bf16 %v2059_v56 }
 0x3fc   :  { %v745_v1 = vsel %vm516_vm4, %v697_v14, %v2060_v59  ;;  %v746_v13 = vsel %vm516_vm4, %v698_v21, %v2061_v58 }
 0x3fd   :  { %v754_v0 = vpack.c.bf16 %v746_v13, %v745_v1  ;;  %v2069_v60 = vpop.permute.xlu0 %2068 }
 0x3fe   :  { %v2071_v61 = vunpack.i.h.bf16 %v2069_v60  ;;  %v2070_v62 = vunpack.i.l.bf16 %v2069_v60 }
 0x3ff   :  { %v2064_v8 = vpop.permute.xlu1 %2063 }
 0x400   :  { %v747_v15 = vsel %vm516_vm4, %v699_v2, %v2070_v62  ;;  %v748_v16 = vsel %vm516_vm4, %v700_v48, %v2071_v61  ;;  %v2066_v17 = vunpack.i.h.bf16 %v2064_v8  ;;  %v2065_v6 = vunpack.i.l.bf16 %v2064_v8  ;;  %v1756_v8 = vld [vmem:[%s3027_s16] ss:$0 sm:$0xff] }
 0x401   :  { %v2079_v19 = vpop.permute.xlu0 %2078  ;;  %v757_v22 = vpack.c.bf16 %v748_v16, %v747_v15 }
 0x402   :  { %v2081_v30 = vunpack.i.h.bf16 %v2079_v19  ;;  %v2080_v31 = vunpack.i.l.bf16 %v2079_v19  ;;  %v749_v4 = vsel %vm95_vm1, %v2060_v59, %v2065_v6  ;;  %v750_v35 = vsel %vm95_vm1, %v2061_v58, %v2066_v17 }
 0x403   :  { %v2074_v40 = vpop.permute.xlu1 %2073  ;;  %v755_v42 = vpack.c.bf16 %v750_v35, %v749_v4  ;;  %v756_v58 = vpack.c.bf16 %v2066_v17, %v2065_v6 }
 0x404   :  { %v2757_v43 = vsel %vm95_vm1, %v1294_v23, %v2080_v31  ;;  %v2760_v28 = vsel %vm95_vm1, %v1295_v29, %v2081_v30  ;;  %v2076_v45 = vunpack.i.h.bf16 %v2074_v40  ;;  %v2075_v46 = vunpack.i.l.bf16 %v2074_v40 }
 0x405   :  { %v2092_v27 = vpack.i.bf16 %v2748_v63, %v2757_v43  ;;  %v2102_v47 = vpack.i.bf16 %v2752_v18, %v2760_v28  ;;  %949 = vmatprep.mubr.bf16.mxu0 %v755_v42 }
 0x406   :  { %950 = vmatmul.mubr.bf16.vlgmr.msra.gmra.mrb[4].mxu0 %v754_v0  ;;  %v751_v12 = vsel %vm95_vm1, %v2070_v62, %v2075_v46  ;;  %v752_v49 = vsel %vm95_vm1, %v2071_v61, %v2076_v45  ;;  %v759_v44 = vpack.c.bf16 %v2076_v45, %v2075_v46 }
 0x407   :  { %1955 = vmatpush3.bf16.msra.mxu0 %v2707_v41  ;;  %v2084_v51 = vpop.permute.xlu1 %2083  ;;  %v758_v52 = vpack.c.bf16 %v752_v49, %v751_v12 }
 0x408   :  { %v2086_v55 = vunpack.i.h.bf16 %v2084_v51  ;;  %v2085_v57 = vunpack.i.l.bf16 %v2084_v51  ;;  %1956 = vmatprep.subr.bf16.mxu0 %v2156_v25 }
 0x409   :  { %957 = vmatprep.mubr.bf16.mxu0 %v758_v52 }
 0x40a   :  { %v2787_v41 = vsel %vm95_vm1, %v1296_v54, %v2085_v57  ;;  %v2790_v56 = vsel %vm95_vm1, %v1297_v53, %v2086_v55 }
 0x40b   :  { %1957 = vmatpush3.bf16.msra.mxu0 %v2156_v25  ;;  %v2117_v37 = vpack.i.bf16 %v2784_v36, %v2787_v41  ;;  %v2122_v38 = vpack.i.bf16 %v2780_v3, %v2790_v56 }
 0x40e   :  { %958 = vmatmul.mubr.bf16.gmra.mrb[8].mxu0 %v757_v22 }
 0x40f   :  { %1958 = vmatprep.mubr.msk.bf16.mxu0 %vm910_vm5, %v756_v58 }
 0x416   :  { %1959 = vmatmul.mubr.msk.bf16.vlgmr.msra.gmra.mrb[12].mxu0 %vm910_vm5, %v759_v44 }
 0x4d9   :  { %v1851_v59 = vpop.f32.mrb[4].mxu0 }
 0x4da   :  { %v1852_v14 = vpop.f32.mrb[5].mxu0 }
 0x4db   :  { %v1853_v21 = vadd.f32 %v1852_v14, %v1851_v59  ;;  %v1854_v1 = vpop.f32.mrb[6].mxu0 }
 0x4dc   :  { %v1855_v13 = vpop.f32.mrb[7].mxu0 }
 0x4dd   :  { %v1856_v0 = vadd.f32 %v1855_v13, %v1854_v1  ;;  %v952_v17 = vadd.f32 %v1853_v21, %v1756_v8 }
 0x4df   :  { %v955_v30 = vadd.f32 %v1856_v0, %v1756_v8 }
 0x4e1   :  { %v1857_v60 = vpop.f32.mrb[8].mxu0 }
 0x4e2   :  { %v1858_v61 = vpop.f32.mrb[9].mxu0 }
 0x4e3   :  { %v1859_v62 = vadd.f32 %v1858_v61, %v1857_v60  ;;  %v1860_v2 = vpop.f32.mrb[10].mxu0 }
 0x4e4   :  { %v1861_v48 = vpop.f32.mrb[11].mxu0 }
 0x4e5   :  { %v1862_v5 = vadd.f32 %v1861_v48, %v1860_v2  ;;  %v960_v15 = vadd.f32 %v1859_v62, %v1756_v8 }
 0x4e7   :  { %v963_v22 = vadd.f32 %v1862_v5, %v1756_v8 }
 0x4e9   :  { %v1960_v16 = vpop.f32.mrb[12].mxu0 }
 0x4ea   :  { %v2801_v6 = vadd.f32 %v1960_v16, %v960_v15  ;;  %v1000_v19 = vpop.f32.mrb[13].mxu0 }
 0x4eb   :  { %v2803_v23 = vadd.f32 %v1000_v19, %v952_v17  ;;  %v1961_v29 = vpop.f32.mrb[14].mxu0  ;;  %v2157_v19 = vld [vmem:[%s3028_s17 + $0x80] sm:$0xff]  }
 0x4ec   :  { %v2805_v31 = vadd.f32 %v1961_v29, %v963_v22  ;;  %v1003_v4 = vpop.f32.mrb[15].mxu0  ;;  %v1030_v42 = vmul.f32 %v2801_v6, %v2801_v6  ;;  %v1018_v12 = vsel %vm516_vm4, %v2801_v6, 0.0  ;;  %v2158_v22 = vld [vmem:[%s3028_s17 + $0x88] sm:$0xff]   ;;  %v2159_v29 = vld [vmem:[%s3028_s17 + $0x90] sm:$0xff]  }
 0x4ed   :  { %v1028_v35 = vmul.f32 %v2803_v23, %v2803_v23  ;;  %v2809_v40 = vadd.f32 %v1003_v4, %v955_v30  ;;  %v1015_v45 = vsel %vm516_vm4, %v2803_v23, 0.0  ;;  %v2162_v30 = vld [vmem:[%s3028_s17 + $0x40] sm:$0xff]  }
 0x4ee   :  { %v1031_v51 = vmul.f32 %v2805_v31, %v2805_v31  ;;  %v1035_v55 = vsel %vm516_vm4, %v1030_v42, 0.0  ;;  %v1020_v57 = vsel %vm516_vm4, %v2805_v31, 0.0  ;;  %v2163_v4 = vld [vmem:[%s3028_s17] sm:$0xff]   ;;  %1880 = vmatprep.subr.bf16.mxu0 %v2162_v30  ;;  %v2166_v42 = vld [vmem:[%s3028_s17 + $0x8] sm:$0xff]   ;;  %v2180_v30 = vld [vmem:[%s3028_s17 + $0x70] sm:$0xff]  }
 0x4ef   :  { %v1016_v46 = vsel %vm516_vm4, %v2809_v40, 0.0  ;;  %v1029_v25 = vmul.f32 %v2809_v40, %v2809_v40  ;;  %v1032_v49 = vsel %vm516_vm4, %v1028_v35, 0.0  ;;  %1881 = vmatpush3.bf16.msra.mxu0 %v2163_v4  ;;  %v2165_v35 = vld [vmem:[%s3028_s17 + $0x48] sm:$0xff]  }
 0x4f0   :  { %v1017_v9 = vadd.f32 %v1016_v46, %v1015_v45  ;;  %v1037_v59 = vsel %vm516_vm4, %v1031_v51, 0.0  ;;  %v2160_v45 = vld [vmem:[%s3028_s17 + $0x98] sm:$0xff]   ;;  %1882 = vmatprep.subr.bf16.mxu0 %v2165_v35  ;;  %v2168_v46 = vld [vmem:[%s3028_s17 + $0x50] sm:$0xff]   ;;  %v2174_v51 = vld [vmem:[%s3028_s17 + $0x60] sm:$0xff]  }
 0x4f1   :  { %v1033_v52 = vsel %vm516_vm4, %v1029_v25, 0.0  ;;  %v2169_v25 = vld [vmem:[%s3028_s17 + $0x10] sm:$0xff]  }
 0x4f2   :  { %v1019_v53 = vadd.f32 %v1018_v12, %v1017_v9  ;;  %v1034_v54 = vadd.f32 %v1033_v52, %v1032_v49  ;;  %v2161_v9 = vld [vmem:[%s3028_s17 + $0xa0] sm:$0xff]   ;;  %v2171_v12 = vld [vmem:[%s3028_s17 + $0x58] sm:$0xff]   ;;  %v2164_v52 = vld [vmem:[%s3028_s17 + $0xa8] sm:$0xff]  }
 0x4f3   :  { %1883 = vmatpush3.bf16.msra.mxu0 %v2166_v42  ;;  %v2172_v49 = vld [vmem:[%s3028_s17 + $0x18] sm:$0xff]  }
 0x4f4   :  { %v1021_v58 = vadd.f32 %v1020_v57, %v1019_v53  ;;  %v1036_v44 = vadd.f32 %v1035_v55, %v1034_v54  ;;  %1884 = vmatprep.subr.bf16.mxu0 %v2168_v46  ;;  %v2175_v53 = vld [vmem:[%s3028_s17 + $0x20] sm:$0xff]   ;;  %v2167_v54 = vld [vmem:[%s3028_s17 + $0xb0] sm:$0xff]   ;;  %v2177_v55 = vld [vmem:[%s3028_s17 + $0x68] sm:$0xff]  }
 0x4f5   :  { %v2170_v57 = vld [vmem:[%s3028_s17 + $0xb8] sm:$0xff]  }
 0x4f6   :  { %v1022_v14 = vrot.slane %v1021_v58, 4  ;;  %v1038_v21 = vadd.f32 %v1037_v59, %v1036_v44  ;;  %v2176_v44 = vld [vmem:[%s3028_s17 + $0xc8] sm:$0xff]  }
 0x4f7   :  { %1885 = vmatpush3.bf16.msra.mxu0 %v2169_v25 }
 0x4f8   :  { %v1023_v1 = vadd.f32 %v1022_v14, %v1021_v58  ;;  %v1039_v13 = vrot.slane %v1038_v21, 4  ;;  %1886 = vmatprep.subr.bf16.mxu0 %v2171_v12  ;;  %v2173_v58 = vld [vmem:[%s3028_s17 + $0xc0] sm:$0xff]   ;;  %v2184_v12 = vld [vmem:[%s3028_s17 + $0x38] sm:$0xff]  }
 0x4fa   :  { %v1024_v0 = vrot.slane %v1023_v1, 2  ;;  %v1040_v60 = vadd.f32 %v1039_v13, %v1038_v21 }
 0x4fb   :  { %1887 = vmatpush3.bf16.msra.mxu0 %v2172_v49  ;;  %v2185_v49 = vld [vmem:[%s3028_s17 + $0xe0] sm:$0xff]  }
 0x4fc   :  { %v1025_v61 = vadd.f32 %v1024_v0, %v1023_v1  ;;  %v1041_v62 = vrot.slane %v1040_v60, 2  ;;  %1888 = vmatprep.subr.bf16.mxu0 %v2174_v51 }
 0x4fe   :  { %v1026_v2 = vrot.slane %v1025_v61, 1  ;;  %v1042_v48 = vadd.f32 %v1041_v62, %v1040_v60 }
 0x4ff   :  { %1889 = vmatpush3.bf16.msra.mxu0 %v2175_v53 }
 0x500   :  { %v1043_v5 = vrot.slane %v1042_v48, 1  ;;  %v1027_v8 = vadd.f32 %v1026_v2, %v1025_v61  ;;  %1890 = vmatprep.subr.bf16.mxu0 %v2177_v55  ;;  %v1125_v2 = vld [vmem:[%s3029_s9] sm:$0x1] }
 0x502   :  { %v1044_v15 = vadd.f32 %v1043_v5, %v1042_v48 }
 0x504   :  { %v1045_v16 = vsel %vm126_vm2, %v1027_v8, %v1044_v15  ;;  %v2178_v8 = vld [vmem:[%s3028_s17 + $0x28] sm:$0xff]   ;;  %v2179_v15 = vld [vmem:[%s3028_s17 + $0xd0] sm:$0xff]  }
 0x505   :  { %v1046_v17 = vmul.f32 0.03125, %v1045_v16  ;;  %1891 = vmatpush3.bf16.msra.mxu0 %v2178_v8 }
 0x506   :  { %1892 = vmatprep.subr.bf16.mxu0 %v2180_v30 }
 0x507   :  { %1987 = vmatmul.mubr.msk.f32.vlgmr.msra.gmra.mrb[8].mxu1 %vm516_vm4, %v1046_v17 }
 0x508   :  { %1681 = vmatpush1.bf16.msra.mxu1 %v2157_v19 }
 0x509   :  { %1682 = vmatprep.subr.bf16.mxu1 %v2196_v7 }
 0x50c   :  { %1683 = vmatpush1.bf16.msra.mxu1 %v2158_v22 }
 0x50d   :  { %1684 = vmatprep.subr.bf16.mxu1 %v2196_v7 }
 0x510   :  { %1685 = vmatpush1.bf16.msra.mxu1 %v2159_v29 }
 0x511   :  { %1686 = vmatprep.subr.bf16.mxu1 %v2196_v7 }
 0x514   :  { %1687 = vmatpush1.bf16.msra.mxu1 %v2160_v45 }
 0x515   :  { %1688 = vmatprep.subr.bf16.mxu1 %v2196_v7 }
 0x518   :  { %1689 = vmatpush1.bf16.msra.mxu1 %v2161_v9  ;;  %v2183_v9 = vld [vmem:[%s3028_s17 + $0x78] sm:$0xff]  }
 0x519   :  { %1690 = vmatprep.subr.bf16.mxu1 %v2196_v7 }
 0x51c   :  { %1691 = vmatpush1.bf16.msra.mxu1 %v2164_v52 }
 0x51d   :  { %1692 = vmatprep.subr.bf16.mxu1 %v2196_v7 }
 0x520   :  { %1693 = vmatpush1.bf16.msra.mxu1 %v2167_v54 }
 0x521   :  { %1694 = vmatprep.subr.bf16.mxu1 %v2196_v7 }
 0x524   :  { %1695 = vmatpush1.bf16.msra.mxu1 %v2170_v57 }
 0x525   :  { %1696 = vmatprep.subr.bf16.mxu1 %v2196_v7 }
 0x528   :  { %1697 = vmatpush1.bf16.msra.mxu1 %v2173_v58 }
 0x529   :  { %1698 = vmatprep.subr.bf16.mxu1 %v2196_v7 }
 0x52c   :  { %1699 = vmatpush1.bf16.msra.mxu1 %v2176_v44 }
 0x52d   :  { %1700 = vmatprep.subr.bf16.mxu1 %v2196_v7 }
 0x530   :  { %1701 = vmatpush1.bf16.msra.mxu1 %v2179_v15 }
 0x531   :  { %1702 = vmatprep.subr.bf16.mxu1 %v2196_v7 }
 0x5da   :  { %v1116_v59 = vpop.f32.mrb[8].mxu1 }
 0x5db   :  { %v1120_v14 = vmul.f32 %v1116_v59, %v1116_v59  ;;  %v1988_v21 = vpop.f32.mrb[9].mxu1  ;;  %v1130_v48 = vrot.slane %v1116_v59, %v2449_v26 }
 0x5dd   :  { %v1122_v1 = vrot.slane %v1120_v14, 7  ;;  %v1131_v17 = vsub.f32 %v2803_v23, %v1130_v48  ;;  %v1132_v19 = vsub.f32 %v2809_v40, %v1130_v48  ;;  %v1133_v22 = vsub.f32 %v2801_v6, %v1130_v48  ;;  %v1778_v23 = vld [vmem:[%s3030_s10] ss:$0 sm:$0xff]  ;;  %v2181_v40 = vld [vmem:[%s3028_s17 + $0x30] sm:$0xff]   ;;  %v2182_v6 = vld [vmem:[%s3028_s17 + $0xd8] sm:$0xff]  }
 0x5de   :  { %v1134_v29 = vsub.f32 %v2805_v31, %v1130_v48  ;;  %1893 = vmatpush3.bf16.msra.mxu0 %v2181_v40  ;;  %1703 = vmatpush1.bf16.msra.mxu1 %v2182_v6 }
 0x5df   :  { %v1124_v13 = vsub.f32 %v1116_v59, %v1122_v1  ;;  %1704 = vmatprep.subr.bf16.mxu1 %v2196_v7  ;;  %1894 = vmatprep.subr.bf16.mxu0 %v2183_v9  ;;  %v2186_v1 = vld [vmem:[%s3028_s17 + $0xe8] sm:$0xff]   ;;  %s2200_s17 = smov 32  }
 0x5e1   :  { %v1135_v0 = vadd.f32 1e-05, %v1124_v13 }
 0x5e2   :  { %1895 = vmatpush3.bf16.msra.mxu0 %v2184_v12  ;;  %1705 = vmatpush1.bf16.msra.mxu1 %v2185_v49 }
 0x5e3   :  { %2191 = vrsqrt.f32 %v1135_v0  ;;  %1706 = vmatprep.subr.bf16.mxu1 %v2196_v7 }
 0x5e6   :  { %1707 = vmatpush1.bf16.msra.mxu1 %v2186_v1 }
 0x5ed   :  { %v2192_v60 = vpop.eup %2191 }
 0x5ee   :  { %v1144_v61 = vrot.slane %v2192_v60, %v2447_v24 }
 0x5f0   :  { %v1145_v62 = vcombine.high %v1144_v61, %v1144_v61 }
 0x5f2   :  { %v1152_v5 = vrot.slane %v1145_v62, %v2447_v24 }
 0x5f4   :  { %v1154_v16 = vmul.f32 %v1152_v5, %v1125_v2 }
 0x5f6   :  { %v1159_v24 = vrot.slane %v1154_v16, %v2449_v26 }
 0x5f8   :  { %v1163_v31 = vmul.f32 %v1159_v24, %v1133_v22  ;;  %v1161_v26 = vmul.f32 %v1159_v24, %v1131_v17  ;;  %v1162_v4 = vmul.f32 %v1159_v24, %v1132_v19  ;;  %v1164_v35 = vmul.f32 %v1159_v24, %v1134_v29 }
 0x5fa   :  { %v1171_v42 = vadd.f32 %v1778_v23, %v1161_v26  ;;  %v1172_v45 = vadd.f32 %v1778_v23, %v1162_v4  ;;  %v1173_v46 = vadd.f32 %v1778_v23, %v1163_v31  ;;  %v1174_v25 = vadd.f32 %v1778_v23, %v1164_v35 }
 0x5fc   :  { %v1175_v51 = vmax.f32 %v1171_v42, 0.0  ;;  %v1176_v52 = vmax.f32 %v1172_v45, 0.0  ;;  %v1177_v53 = vmax.f32 %v1173_v46, 0.0  ;;  %v1178_v54 = vmax.f32 %v1174_v25, 0.0 }
 0x5fe   :  { %v1211_v55 = vrot.slane %v1176_v52, 7  ;;  %v2087_v57 = vpack.i.bf16 %v1176_v52, %v1175_v51  ;;  %v1210_v58 = vrot.slane %v1175_v51, 7  ;;  %v1226_v44 = vrot.slane %v1175_v51, 1 }
 0x5ff   :  { %v1227_v59 = vrot.slane %v1176_v52, 1  ;;  %v1229_v14 = vrot.slane %v1177_v53, 1  ;;  %v1215_v21 = vrot.slane %v1178_v54, 7  ;;  %v1213_v0 = vrot.slane %v1177_v53, 7 }
 0x600   :  { %2088 = vrot.lane.b32.xlu0 %v2087_v57, %s2199_s8  ;;  %v1212_v13 = vsel %vm126_vm2, %v1210_v58, %v1211_v55  ;;  %v1231_v62 = vrot.slane %v1178_v54, 1  ;;  %v2107_v17 = vpack.i.bf16 %v1178_v54, %v1177_v53  ;;  %v1221_v43 = vsel %vm126_vm2, 0.0, %v1210_v58 }
 0x601   :  { %v1228_v60 = vsel %vm301_vm3, %v1226_v44, %v1227_v59  ;;  %v1230_v61 = vsel %vm301_vm3, %v1227_v59, %v1229_v14  ;;  %v1214_v48 = vsel %vm126_vm2, %v1211_v55, %v1213_v0  ;;  %v1216_v5 = vsel %vm126_vm2, %v1213_v0, %v1215_v21 }
 0x602   :  { %v1238_v7 = vmul.f32 %v1228_v60, %v2460_v33  ;;  %v1239_v2 = vmul.f32 %v1230_v61, %v2476_v11  ;;  %v1232_v15 = vsel %vm301_vm3, %v1229_v14, %v1231_v62  ;;  %v1237_v16 = vsel %vm301_vm3, %v1231_v62, 0.0 }
 0x603   :  { %v1240_v33 = vmul.f32 %v1232_v15, %v2526_v39  ;;  %v1241_v11 = vmul.f32 %v1237_v16, %v2517_v32  ;;  %v1222_v19 = vmul.f32 %v1221_v43, %v2462_v34  ;;  %v1223_v18 = vmul.f32 %v1212_v13, %v2478_v50 }
 0x604   :  { %2093 = vrot.lane.b32.xlu0 %v2092_v27, %s2200_s17  ;;  %v2097_v8 = vpack.i.bf16 %v1239_v2, %v1238_v7  ;;  %v1225_v6 = vmul.f32 %v1216_v5, %v2491_v10 }
 0x605   :  { %v2112_v63 = vpack.i.bf16 %v1241_v11, %v1240_v33 }
 0x606   :  { %2098 = vrot.lane.b32.xlu1 %v2097_v8, %s2198_s13 }
 0x608   :  { %2108 = vrot.lane.b32.xlu0 %v2107_v17, %s2199_s8 }
 0x60a   :  { %2103 = vrot.lane.b32.xlu1 %v2102_v47, %s2200_s17 }
 0x60c   :  { %2118 = vrot.lane.b32.xlu0 %v2117_v37, %s2200_s17 }
 0x60e   :  { %2113 = vrot.lane.b32.xlu1 %v2112_v63, %s2198_s13 }
 0x612   :  { %2123 = vrot.lane.b32.xlu1 %v2122_v38, %s2200_s17  ;;  %v1224_v38 = vmul.f32 %v1214_v48, %v2497_v20  ;;  %v1780_v48 = vld [vmem:[%s3031_s18] ss:$0 sm:$0xff] }
 0x672   :  { %v2089_v39 = vpop.permute.xlu0 %2088 }
 0x673   :  { %v2091_v27 = vunpack.i.h.bf16 %v2089_v39  ;;  %v2090_v32 = vunpack.i.l.bf16 %v2089_v39 }
 0x675   :  { %v1270_v28 = vsel %vm516_vm4, %v1222_v19, %v2090_v32  ;;  %v1271_v47 = vsel %vm516_vm4, %v1223_v18, %v2091_v27 }
 0x676   :  { %v1371_v36 = vpack.c.bf16 %v1271_v47, %v1270_v28  ;;  %v2094_v41 = vpop.permute.xlu0 %2093 }
 0x677   :  { %v2096_v3 = vunpack.i.h.bf16 %v2094_v41  ;;  %v2095_v24 = vunpack.i.l.bf16 %v2094_v41 }
 0x678   :  { %v2099_v37 = vpop.permute.xlu1 %2098 }
 0x679   :  { %v2101_v22 = vunpack.i.h.bf16 %v2099_v37  ;;  %v2100_v29 = vunpack.i.l.bf16 %v2099_v37  ;;  %v1354_v45 = vsel %vm910_vm5, %v2095_v24, %v2096_v3 }
 0x67a   :  { %v2109_v56 = vpop.permute.xlu0 %2108 }
 0x67b   :  { %v2111_v30 = vunpack.i.h.bf16 %v2109_v56  ;;  %v2110_v23 = vunpack.i.l.bf16 %v2109_v56  ;;  %v1274_v34 = vsel %vm95_vm1, %v2090_v32, %v2100_v29  ;;  %v1275_v50 = vsel %vm95_vm1, %v2091_v27, %v2101_v22 }
 0x67c   :  { %v2104_v40 = vpop.permute.xlu1 %2103  ;;  %v1372_v4 = vpack.c.bf16 %v1275_v50, %v1274_v34  ;;  %v1366_v20 = vsel %vm910_vm5, %v2100_v29, %v2095_v24 }
 0x67d   :  { %v2106_v31 = vunpack.i.h.bf16 %v2104_v40  ;;  %v2105_v26 = vunpack.i.l.bf16 %v2104_v40  ;;  %v1272_v35 = vsel %vm516_vm4, %v1224_v38, %v2110_v23  ;;  %v1273_v42 = vsel %vm516_vm4, %v1225_v6, %v2111_v30 }
 0x67e   :  { %1663 = vmatprep.mubr.bf16.mxu0 %v1372_v4  ;;  %v2119_v49 = vpop.permute.xlu0 %2118  ;;  %v1375_v51 = vpack.c.bf16 %v1273_v42, %v1272_v35 }
 0x67f   :  { %v1355_v46 = vsel %vm910_vm5, %v2105_v26, %v2106_v31  ;;  %v1367_v25 = vsel %vm910_vm5, %v2101_v22, %v2105_v26  ;;  %1664 = vmatmul.mubr.bf16.vlgmr.msra.gmra.mrb[16].mxu0 %v1371_v36  ;;  %v2121_v54 = vunpack.i.h.bf16 %v2119_v49  ;;  %v2120_v55 = vunpack.i.l.bf16 %v2119_v49 }
 0x680   :  { %v1373_v9 = vpack.c.bf16 %v1367_v25, %v1366_v20  ;;  %v1374_v12 = vpack.c.bf16 %v1355_v46, %v1354_v45  ;;  %v2114_v10 = vpop.permute.xlu1 %2113 }
 0x681   :  { %v2116_v52 = vunpack.i.h.bf16 %v2114_v10  ;;  %v2115_v53 = vunpack.i.l.bf16 %v2114_v10  ;;  %v1356_v1 = vsel %vm910_vm5, %v2120_v55, %v2121_v54 }
 0x682   :  { %1811 = vmatprep.mubr.msk.bf16.mxu1 %vm516_vm4, %v1374_v12 }
 0x683   :  { %1713 = vmatmul.mubr.bf16.vlgmr.msra.gmra.mrb[12].mxu1 %v1373_v9  ;;  %v1276_v57 = vsel %vm95_vm1, %v2110_v23, %v2115_v53  ;;  %v1277_v58 = vsel %vm95_vm1, %v2111_v30, %v2116_v52  ;;  %v1368_v0 = vsel %vm910_vm5, %v2115_v53, %v2120_v55 }
 0x684   :  { %v2124_v44 = vpop.permute.xlu1 %2123  ;;  %v1376_v59 = vpack.c.bf16 %v1277_v58, %v1276_v57 }
 0x685   :  { %v2126_v14 = vunpack.i.h.bf16 %v2124_v44  ;;  %v2125_v21 = vunpack.i.l.bf16 %v2124_v44 }
 0x686   :  { %1671 = vmatprep.mubr.bf16.mxu0 %v1376_v59 }
 0x687   :  { %v1357_v13 = vsel %vm910_vm5, %v2125_v21, %v2126_v14  ;;  %v1369_v60 = vsel %vm910_vm5, %v2116_v52, %v2125_v21  ;;  %1672 = vmatmul.mubr.bf16.gmra.mrb[20].mxu0 %v1375_v51 }
 0x688   :  { %v1378_v61 = vpack.c.bf16 %v1357_v13, %v1356_v1  ;;  %v1377_v62 = vpack.c.bf16 %v1369_v60, %v1368_v0 }
 0x68a   :  { %1812 = vmatprep.mubr.msk.bf16.mxu1 %vm516_vm4, %v1378_v61 }
 0x68b   :  { %1721 = vmatmul.mubr.bf16.gmra.mrb[16].mxu1 %v1377_v62 }
 0x752   :  { %v1896_v7 = vpop.f32.mrb[16].mxu0 }
 0x753   :  { %v1897_v2 = vpop.f32.mrb[17].mxu0 }
 0x754   :  { %v1898_v5 = vadd.f32 %v1897_v2, %v1896_v7  ;;  %v1899_v8 = vpop.f32.mrb[18].mxu0 }
 0x755   :  { %v1900_v15 = vpop.f32.mrb[19].mxu0 }
 0x756   :  { %v1714_v16 = vpop.f32.mrb[12].mxu1  ;;  %v1901_v17 = vadd.f32 %v1900_v15, %v1899_v8  ;;  %v1666_v33 = vadd.f32 %v1898_v5, %v1780_v48 }
 0x757   :  { %v1716_v11 = vpop.f32.mrb[13].mxu1 }
 0x758   :  { %v1717_v63 = vpop.f32.mrb[14].mxu1  ;;  %v1715_v43 = vadd.f32 %v1714_v16, %v1666_v33  ;;  %v1669_v39 = vadd.f32 %v1901_v17, %v1780_v48 }
 0x759   :  { %v1719_v27 = vpop.f32.mrb[15].mxu1 }
 0x75a   :  { %1729 = vst [vmem:[%s3032_s19] sm:$0xff] %v1715_v43  ;;  %v1718_v32 = vadd.f32 %v1717_v63, %v1669_v39  ;;  %v1902_v19 = vpop.f32.mrb[20].mxu0 }
 0x75b   :  { %v1903_v18 = vpop.f32.mrb[21].mxu0 }
 0x75c   :  { %1730 = vst [vmem:[%s3032_s19 + $0x8] sm:$0xff] %v1718_v32  ;;  %v1904_v28 = vadd.f32 %v1903_v18, %v1902_v19  ;;  %v1905_v47 = vpop.f32.mrb[22].mxu0 }
 0x75d   :  { %v1906_v36 = vpop.f32.mrb[23].mxu0 }
 0x75e   :  { %v1722_v41 = vpop.f32.mrb[16].mxu1  ;;  %v1907_v37 = vadd.f32 %v1906_v36, %v1905_v47  ;;  %v1674_v22 = vadd.f32 %v1904_v28, %v1780_v48 }
 0x75f   :  { %v1724_v29 = vpop.f32.mrb[17].mxu1 }
 0x760   :  { %v1725_v3 = vpop.f32.mrb[18].mxu1  ;;  %v1723_v56 = vadd.f32 %v1722_v41, %v1674_v22  ;;  %v1677_v38 = vadd.f32 %v1907_v37, %v1780_v48 }
 0x761   :  { %v1727_v24 = vpop.f32.mrb[19].mxu1 }
 0x762   :  { %1731 = vst [vmem:[%s3032_s19 + $0x10] sm:$0xff] %v1723_v56  ;;  %v1726_v30 = vadd.f32 %v1725_v3, %v1677_v38 }
 0x764   :  { %1732 = vst [vmem:[%s3032_s19 + $0x18] sm:$0xff] %v1726_v30 }

</bundles_post_ra>
